<compile_context>
chip_gen: v7x
topology: tpu7x:2x2x1
jax: 0.10.0
libtpu: 0.0.40
codegen_flags: <defaults>
</compile_context>

<pallas_src>
import math

import jax
import jax.numpy as jnp
from jax import lax
from jax.experimental import pallas as pl
from jax.experimental.pallas import tpu as pltpu

# ---------------- small, self-consistent config ----------------
B, N, D = 2, 8, 32          # batch, seq, dim == d_model
BN = B * N                  # folded rows
DEPTH = 2
HEADS = 2
DIM_HEAD = 16
INNER = HEADS * DIM_HEAD    # 32 -> project_out is True (heads != 1)
MLP = 64
NUM_ACTIONS = 4
VOCAB = 32
AV = NUM_ACTIONS * VOCAB    # 128 (lane-dense output)
EPS = 1e-5                  # F.layer_norm / nn.LayerNorm default
SCALE = DIM_HEAD ** (-0.5)

# row layout of the packed per-layer vector slab: (DEPTH*6 + 1, D)
V_LN1_G, V_LN1_B, V_OUT_B, V_LN2_G, V_LN2_B, V_FF2_B = range(6)
N_VEC_PER_LAYER = 6
V_LNF_G = DEPTH * N_VEC_PER_LAYER


def _layer_norm(x, g, b):
    mu = jnp.mean(x, axis=-1, keepdims=True)
    var = jnp.mean((x - mu) ** 2, axis=-1, keepdims=True)
    return (x - mu) * lax.rsqrt(var + EPS) * g + b


def _gelu_exact(x):
    # nn.GELU default is the exact (erf) form.
    return 0.5 * x * (1.0 + lax.erf(x * (1.0 / math.sqrt(2.0))))


# ---------------- Pallas kernel: whole decoder, whole batch, one step ----------------
def decoder_kernel(x_ref, pe_ref, vecs_ref,
                   qkv_w_ref, out_w_ref, ff1_w_ref, ff1_b_ref, ff2_w_ref,
                   logit_w_ref, logit_b_ref,
                   o_ref):
    # x += positionalencoding(x)  ==>  x = 2*x + pe      (BN, D)
    x = 2.0 * x_ref[...] + pe_ref[...]

    for l in range(DEPTH):
        base = l * N_VEC_PER_LAYER

        # ----- PreNorm + multi-head self-attention (residual) -----
        h = _layer_norm(x,
                        vecs_ref[base + V_LN1_G:base + V_LN1_G + 1],
                        vecs_ref[base + V_LN1_B:base + V_LN1_B + 1])
        qkv = jnp.dot(h, qkv_w_ref[l], preferred_element_type=jnp.float32)   # (BN, 3*INNER)

        q = qkv[:, :INNER] * SCALE
        k = qkv[:, INNER:2 * INNER]
        v = qkv[:, 2 * INNER:]
        # (BN, INNER) -> (B, N, INNER): leading-dim split, layout preserving.
        q3 = q.reshape(B, N, INNER)
        k3 = k.reshape(B, N, INNER)
        v3 = v.reshape(B, N, INNER)

        out_w_l = out_w_ref[l]                                               # (INNER, D)

        attn_proj = None
        for hh in range(HEADS):
            sl = slice(hh * DIM_HEAD, (hh + 1) * DIM_HEAD)
            qh, kh, vh = q3[:, :, sl], k3[:, :, sl], v3[:, :, sl]            # (B, N, DH)
            # scores: contract last dims -> no explicit transpose
            dots = jnp.einsum('bnd,bmd->bnm', qh, kh,
                              preferred_element_type=jnp.float32)            # (B, N, N)
            dots = dots - jnp.max(dots, axis=-1, keepdims=True)
            e = jnp.exp(dots)
            attn = e * pl.reciprocal(jnp.sum(e, axis=-1, keepdims=True),
                                     approx=True)
            ctx = jnp.einsum('bnm,bmd->bnd', attn, vh,
                             preferred_element_type=jnp.float32)             # (B, N, DH)
            # accumulate head directly into the output projection (no concat)
            proj = jnp.dot(ctx.reshape(BN, DIM_HEAD), out_w_l[sl, :],
                           preferred_element_type=jnp.float32)               # (BN, D)
            attn_proj = proj if attn_proj is None else attn_proj + proj

        x = attn_proj + vecs_ref[base + V_OUT_B:base + V_OUT_B + 1] + x

        # ----- PreNorm + FeedForward (residual) -----
        h = _layer_norm(x,
                        vecs_ref[base + V_LN2_G:base + V_LN2_G + 1],
                        vecs_ref[base + V_LN2_B:base + V_LN2_B + 1])
        h = jnp.dot(h, ff1_w_ref[l], preferred_element_type=jnp.float32) + ff1_b_ref[l:l + 1]
        h = _gelu_exact(h)
        h = (jnp.dot(h, ff2_w_ref[l], preferred_element_type=jnp.float32)
             + vecs_ref[base + V_FF2_B:base + V_FF2_B + 1])
        x = h + x

    # ----- to_logits: LayerNorm(gamma, beta=0) -> Linear(d_model, A*V) -----
    h = _layer_norm(x, vecs_ref[V_LNF_G:V_LNF_G + 1], 0.0)
    o_ref[...] = jnp.dot(h, logit_w_ref[...],
                         preferred_element_type=jnp.float32) + logit_b_ref[...]


# ---------------- wrapper ----------------
def transformers_decoder(x, pe, params):
    # Pack all tiny (D,)-wide per-layer vectors into one slab -> one DMA.
    vec_rows = []
    for l in range(DEPTH):
        vec_rows += [params["ln1_g"][l], params["ln1_b"][l], params["out_b"][l],
                     params["ln2_g"][l], params["ln2_b"][l], params["ff2_b"][l]]
    vec_rows.append(params["lnf_g"][0])
    vecs = jnp.stack(vec_rows, axis=0)                                # (DEPTH*6+1, D)

    x2 = x.reshape(BN, D)                                             # fold batch into M
    pe2 = jnp.broadcast_to(pe[None], (B, N, D)).reshape(BN, D)        # pe per folded row

    ins = [x2, pe2, vecs,
           params["qkv_w"], params["out_w"], params["ff1_w"], params["ff1_b"],
           params["ff2_w"], params["logit_w"], params["logit_b"]]

    def full_spec(a):
        nd = a.ndim
        return pl.BlockSpec(a.shape, lambda i, _nd=nd: (0,) * _nd)

    out = pl.pallas_call(
        decoder_kernel,
        out_shape=jax.ShapeDtypeStruct((BN, AV), jnp.float32),
        grid=(1,),                                                    # single step: overhead-bound problem
        in_specs=[full_spec(a) for a in ins],
        out_specs=pl.BlockSpec((BN, AV), lambda i: (0, 0)),           # lane-dense (16, 128) slab
        compiler_params=pltpu.CompilerParams(dimension_semantics=("arbitrary",)),
    )(*ins)
    return out.reshape(B, N, NUM_ACTIONS, VOCAB)


# ---------------- deterministic synthetic parameters ----------------
def build_params(key):
    ks = jax.random.split(key, 14)

    def nrm(k, shape, s=0.05):
        return jax.random.normal(k, shape, jnp.float32) * s

    return dict(
        ln1_g=jnp.ones((DEPTH, D), jnp.float32) + nrm(ks[0], (DEPTH, D), 0.02),
        ln1_b=nrm(ks[1], (DEPTH, D), 0.02),
        qkv_w=nrm(ks[2], (DEPTH, D, 3 * INNER)),
        out_w=nrm(ks[3], (DEPTH, INNER, D)),
        out_b=nrm(ks[4], (DEPTH, D), 0.02),
        ln2_g=jnp.ones((DEPTH, D), jnp.float32) + nrm(ks[5], (DEPTH, D), 0.02),
        ln2_b=nrm(ks[6], (DEPTH, D), 0.02),
        ff1_w=nrm(ks[7], (DEPTH, D, MLP)),
        ff1_b=nrm(ks[8], (DEPTH, MLP), 0.02),
        ff2_w=nrm(ks[9], (DEPTH, MLP, D)),
        ff2_b=nrm(ks[10], (DEPTH, D), 0.02),
        lnf_g=jnp.ones((1, D), jnp.float32) + nrm(ks[11], (1, D), 0.02),
        logit_w=nrm(ks[12], (D, AV)),
        logit_b=nrm(ks[13], (1, AV), 0.02),
    )


def positional_encoding(n, d):
    pos = jnp.arange(n, dtype=jnp.float32)[:, None]
    div = jnp.exp(jnp.arange(0, d, 2, dtype=jnp.float32) * (-math.log(10000.0) / d))
    pe = jnp.zeros((n, d), jnp.float32)
    pe = pe.at[:, 0::2].set(jnp.sin(pos * div))
    pe = pe.at[:, 1::2].set(jnp.cos(pos * div))
    return pe


# ---------------- pure-JAX reference (same math, batched) ----------------
def reference(x, pe, p):
    x = 2.0 * x + pe[None]
    for l in range(DEPTH):
        h = _layer_norm(x, p["ln1_g"][l], p["ln1_b"][l])
        qkv = h @ p["qkv_w"][l]
        q, k, v = jnp.split(qkv, 3, axis=-1)

        def to_heads(t):
            return t.reshape(B, N, HEADS, DIM_HEAD).transpose(0, 2, 1, 3)

        q, k, v = to_heads(q), to_heads(k), to_heads(v)
        dots = jnp.einsum("bhnd,bhmd->bhnm", q, k) * SCALE
        attn = jax.nn.softmax(dots, axis=-1)
        o = jnp.einsum("bhnm,bhmd->bhnd", attn, v)
        o = o.transpose(0, 2, 1, 3).reshape(B, N, INNER)
        x = o @ p["out_w"][l] + p["out_b"][l] + x
        h = _layer_norm(x, p["ln2_g"][l], p["ln2_b"][l])
        h = _gelu_exact(h @ p["ff1_w"][l] + p["ff1_b"][l])
        x = h @ p["ff2_w"][l] + p["ff2_b"][l] + x
    h = _layer_norm(x, p["lnf_g"][0], 0.0)
    logits = h @ p["logit_w"] + p["logit_b"][0]
    return logits.reshape(B, N, NUM_ACTIONS, VOCAB)


if __name__ == "__main__":
    key = jax.random.PRNGKey(0)
    kx, kp = jax.random.split(key)
    x = jax.random.normal(kx, (B, N, D), jnp.float32)
    params = build_params(kp)
    pe = positional_encoding(N, D)

    out = transformers_decoder(x, pe, params)
    out = jax.block_until_ready(out)
    assert out.shape == (B, N, NUM_ACTIONS, VOCAB), out.shape

    ref = jax.block_until_ready(reference(x, pe, params))
    if not jnp.allclose(out, ref, atol=1e-2, rtol=1e-2):
        raise AssertionError("Pallas kernel does not match reference")

    print("KERNEL_OK")
</pallas_src>

<mosaic_0001>
module attributes {stable_mosaic.version = 11 : i64} {
  func.func @decoder_kernel(%arg0: i32, %arg1: memref<16x32xf32, #tpu.memory_space<vmem>>, %arg2: memref<16x32xf32, #tpu.memory_space<vmem>>, %arg3: memref<13x32xf32, #tpu.memory_space<vmem>>, %arg4: memref<2x32x96xf32, #tpu.memory_space<vmem>>, %arg5: memref<2x32x32xf32, #tpu.memory_space<vmem>>, %arg6: memref<2x32x64xf32, #tpu.memory_space<vmem>>, %arg7: memref<2x64xf32, #tpu.memory_space<vmem>>, %arg8: memref<2x64x32xf32, #tpu.memory_space<vmem>>, %arg9: memref<32x128xf32, #tpu.memory_space<vmem>>, %arg10: memref<1x128xf32, #tpu.memory_space<vmem>>, %arg11: memref<16x128xf32, #tpu.memory_space<vmem>>) attributes {dimension_semantics = [#tpu.dimension_semantics<arbitrary>], iteration_bounds = array<i64: 1>, scalar_prefetch = 0 : i64, scratch_operands = 0 : i64, tpu.core_type = #tpu.core_type<tc>, window_params = [{pipeline_mode = #tpu.pipeline_mode<synchronous>, transform_indices = @transform_0, window_bounds = array<i64: 16, 32>}, {pipeline_mode = #tpu.pipeline_mode<synchronous>, transform_indices = @transform_1, window_bounds = array<i64: 16, 32>}, {pipeline_mode = #tpu.pipeline_mode<synchronous>, transform_indices = @transform_2, window_bounds = array<i64: 13, 32>}, {pipeline_mode = #tpu.pipeline_mode<synchronous>, transform_indices = @transform_3, window_bounds = array<i64: 2, 32, 96>}, {pipeline_mode = #tpu.pipeline_mode<synchronous>, transform_indices = @transform_4, window_bounds = array<i64: 2, 32, 32>}, {pipeline_mode = #tpu.pipeline_mode<synchronous>, transform_indices = @transform_5, window_bounds = array<i64: 2, 32, 64>}, {pipeline_mode = #tpu.pipeline_mode<synchronous>, transform_indices = @transform_6, window_bounds = array<i64: 2, 64>}, {pipeline_mode = #tpu.pipeline_mode<synchronous>, transform_indices = @transform_7, window_bounds = array<i64: 2, 64, 32>}, {pipeline_mode = #tpu.pipeline_mode<synchronous>, transform_indices = @transform_8, window_bounds = array<i64: 32, 128>}, {pipeline_mode = #tpu.pipeline_mode<synchronous>, transform_indices = @transform_9, window_bounds = array<i64: 1, 128>}, {pipeline_mode = #tpu.pipeline_mode<synchronous>, transform_indices = @transform_10, window_bounds = array<i64: 16, 128>}]} {
    %c0 = arith.constant 0 : index
    %c0_0 = arith.constant 0 : index
    %0 = vector.load %arg1[%c0, %c0_0] : memref<16x32xf32, #tpu.memory_space<vmem>>, vector<16x32xf32>
    %cst = arith.constant 2.000000e+00 : f32
    %1 = vector.broadcast %cst : f32 to vector<16x32xf32>
    %2 = arith.mulf %1, %0 : vector<16x32xf32>
    %c0_1 = arith.constant 0 : index
    %c0_2 = arith.constant 0 : index
    %3 = vector.load %arg2[%c0_1, %c0_2] : memref<16x32xf32, #tpu.memory_space<vmem>>, vector<16x32xf32>
    %4 = arith.addf %2, %3 : vector<16x32xf32>
    %c0_3 = arith.constant 0 : index
    %c0_4 = arith.constant 0 : index
    %5 = vector.load %arg3[%c0_3, %c0_4] : memref<13x32xf32, #tpu.memory_space<vmem>>, vector<1x32xf32>
    %c1 = arith.constant 1 : index
    %c0_5 = arith.constant 0 : index
    %6 = vector.load %arg3[%c1, %c0_5] : memref<13x32xf32, #tpu.memory_space<vmem>>, vector<1x32xf32>
    %cst_6 = arith.constant dense<0.000000e+00> : vector<16xf32>
    %7 = vector.multi_reduction <add>, %4, %cst_6 [1] : vector<16x32xf32> to vector<16xf32>
    %8 = vector.shape_cast %7 : vector<16xf32> to vector<16x1xf32>
    %cst_7 = arith.constant 3.200000e+01 : f32
    %9 = vector.broadcast %cst_7 : f32 to vector<16x1xf32>
    %10 = arith.divf %8, %9 : vector<16x1xf32>
    %11 = vector.broadcast %10 : vector<16x1xf32> to vector<16x32xf32>
    %12 = arith.subf %4, %11 : vector<16x32xf32>
    %13 = arith.mulf %12, %12 : vector<16x32xf32>
    %cst_8 = arith.constant dense<0.000000e+00> : vector<16xf32>
    %14 = vector.multi_reduction <add>, %13, %cst_8 [1] : vector<16x32xf32> to vector<16xf32>
    %15 = vector.shape_cast %14 : vector<16xf32> to vector<16x1xf32>
    %cst_9 = arith.constant 3.200000e+01 : f32
    %16 = vector.broadcast %cst_9 : f32 to vector<16x1xf32>
    %17 = arith.divf %15, %16 : vector<16x1xf32>
    %18 = vector.broadcast %10 : vector<16x1xf32> to vector<16x32xf32>
    %19 = arith.subf %4, %18 : vector<16x32xf32>
    %cst_10 = arith.constant 9.99999974E-6 : f32
    %20 = vector.broadcast %cst_10 : f32 to vector<16x1xf32>
    %21 = arith.addf %17, %20 : vector<16x1xf32>
    %22 = math.rsqrt %21 : vector<16x1xf32>
    %23 = vector.broadcast %22 : vector<16x1xf32> to vector<16x32xf32>
    %24 = arith.mulf %19, %23 : vector<16x32xf32>
    %25 = vector.broadcast %5 : vector<1x32xf32> to vector<16x32xf32>
    %26 = arith.mulf %24, %25 : vector<16x32xf32>
    %27 = vector.broadcast %6 : vector<1x32xf32> to vector<16x32xf32>
    %28 = arith.addf %26, %27 : vector<16x32xf32>
    %c0_11 = arith.constant 0 : index
    %c0_12 = arith.constant 0 : index
    %c0_13 = arith.constant 0 : index
    %29 = vector.load %arg4[%c0_11, %c0_12, %c0_13] : memref<2x32x96xf32, #tpu.memory_space<vmem>>, vector<1x32x96xf32>
    %30 = vector.shape_cast %29 : vector<1x32x96xf32> to vector<32x96xf32>
    %cst_14 = arith.constant dense<0.000000e+00> : vector<16x96xf32>
    %31 = tpu.matmul %28, %30, %cst_14 {dimension_numbers = #tpu.dot_dimension_numbers<[1], [0], [0], [1], [0, 0, 1, 1], [], []>} : vector<16x32xf32>, vector<32x96xf32>, vector<16x96xf32> -> vector<16x96xf32>
    %32 = vector.extract_strided_slice %31 {offsets = [0, 0], sizes = [16, 32], strides = [1, 1]} : vector<16x96xf32> to vector<16x32xf32>
    %cst_15 = arith.constant 2.500000e-01 : f32
    %33 = vector.broadcast %cst_15 : f32 to vector<16x32xf32>
    %34 = arith.mulf %32, %33 : vector<16x32xf32>
    %35 = vector.extract_strided_slice %31 {offsets = [0, 32], sizes = [16, 32], strides = [1, 1]} : vector<16x96xf32> to vector<16x32xf32>
    %36 = vector.extract_strided_slice %31 {offsets = [0, 64], sizes = [16, 32], strides = [1, 1]} : vector<16x96xf32> to vector<16x32xf32>
    %37 = vector.shape_cast %34 : vector<16x32xf32> to vector<2x8x32xf32>
    %38 = vector.shape_cast %35 : vector<16x32xf32> to vector<2x8x32xf32>
    %39 = vector.shape_cast %36 : vector<16x32xf32> to vector<2x8x32xf32>
    %c0_16 = arith.constant 0 : index
    %c0_17 = arith.constant 0 : index
    %c0_18 = arith.constant 0 : index
    %40 = vector.load %arg5[%c0_16, %c0_17, %c0_18] : memref<2x32x32xf32, #tpu.memory_space<vmem>>, vector<1x32x32xf32>
    %41 = vector.shape_cast %40 : vector<1x32x32xf32> to vector<32x32xf32>
    %42 = vector.extract_strided_slice %37 {offsets = [0, 0, 0], sizes = [2, 8, 16], strides = [1, 1, 1]} : vector<2x8x32xf32> to vector<2x8x16xf32>
    %43 = vector.extract_strided_slice %38 {offsets = [0, 0, 0], sizes = [2, 8, 16], strides = [1, 1, 1]} : vector<2x8x32xf32> to vector<2x8x16xf32>
    %44 = vector.extract_strided_slice %39 {offsets = [0, 0, 0], sizes = [2, 8, 16], strides = [1, 1, 1]} : vector<2x8x32xf32> to vector<2x8x16xf32>
    "tpu.trace_start"() <{level = 10 : i32, message = "bnd,bmd->bnm"}> : () -> ()
    %cst_19 = arith.constant dense<0.000000e+00> : vector<2x8x8xf32>
    %45 = tpu.matmul %42, %43, %cst_19 {dimension_numbers = #tpu.dot_dimension_numbers<[2], [2], [1], [1], [0, 0, 0, 1, 1, 1], [0], [0]>} : vector<2x8x16xf32>, vector<2x8x16xf32>, vector<2x8x8xf32> -> vector<2x8x8xf32>
    "tpu.trace_stop"() : () -> ()
    %cst_20 = arith.constant dense<0xFF800000> : vector<2x8xf32>
    %46 = vector.multi_reduction <maximumf>, %45, %cst_20 [2] : vector<2x8x8xf32> to vector<2x8xf32>
    %47 = vector.shape_cast %46 : vector<2x8xf32> to vector<2x8x1xf32>
    %48 = vector.broadcast %47 : vector<2x8x1xf32> to vector<2x8x8xf32>
    %49 = arith.subf %45, %48 : vector<2x8x8xf32>
    %50 = math.exp %49 : vector<2x8x8xf32>
    %cst_21 = arith.constant dense<0.000000e+00> : vector<2x8xf32>
    %51 = vector.multi_reduction <add>, %50, %cst_21 [2] : vector<2x8x8xf32> to vector<2x8xf32>
    %52 = vector.shape_cast %51 : vector<2x8xf32> to vector<2x8x1xf32>
    %53 = tpu.reciprocal %52 {approx = true} : vector<2x8x1xf32> -> vector<2x8x1xf32>
    %54 = vector.broadcast %53 : vector<2x8x1xf32> to vector<2x8x8xf32>
    %55 = arith.mulf %50, %54 : vector<2x8x8xf32>
    "tpu.trace_start"() <{level = 10 : i32, message = "bnm,bmd->bnd"}> : () -> ()
    %cst_22 = arith.constant dense<0.000000e+00> : vector<2x8x16xf32>
    %56 = tpu.matmul %55, %44, %cst_22 {dimension_numbers = #tpu.dot_dimension_numbers<[2], [1], [1], [2], [0, 0, 0, 1, 1, 2], [0], [0]>} : vector<2x8x8xf32>, vector<2x8x16xf32>, vector<2x8x16xf32> -> vector<2x8x16xf32>
    "tpu.trace_stop"() : () -> ()
    %57 = vector.shape_cast %56 : vector<2x8x16xf32> to vector<16x16xf32>
    %58 = vector.extract_strided_slice %41 {offsets = [0, 0], sizes = [16, 32], strides = [1, 1]} : vector<32x32xf32> to vector<16x32xf32>
    %cst_23 = arith.constant dense<0.000000e+00> : vector<16x32xf32>
    %59 = tpu.matmul %57, %58, %cst_23 {dimension_numbers = #tpu.dot_dimension_numbers<[1], [0], [0], [1], [0, 0, 1, 1], [], []>} : vector<16x16xf32>, vector<16x32xf32>, vector<16x32xf32> -> vector<16x32xf32>
    %60 = vector.extract_strided_slice %37 {offsets = [0, 0, 16], sizes = [2, 8, 16], strides = [1, 1, 1]} : vector<2x8x32xf32> to vector<2x8x16xf32>
    %61 = vector.extract_strided_slice %38 {offsets = [0, 0, 16], sizes = [2, 8, 16], strides = [1, 1, 1]} : vector<2x8x32xf32> to vector<2x8x16xf32>
    %62 = vector.extract_strided_slice %39 {offsets = [0, 0, 16], sizes = [2, 8, 16], strides = [1, 1, 1]} : vector<2x8x32xf32> to vector<2x8x16xf32>
    "tpu.trace_start"() <{level = 10 : i32, message = "bnd,bmd->bnm"}> : () -> ()
    %cst_24 = arith.constant dense<0.000000e+00> : vector<2x8x8xf32>
    %63 = tpu.matmul %60, %61, %cst_24 {dimension_numbers = #tpu.dot_dimension_numbers<[2], [2], [1], [1], [0, 0, 0, 1, 1, 1], [0], [0]>} : vector<2x8x16xf32>, vector<2x8x16xf32>, vector<2x8x8xf32> -> vector<2x8x8xf32>
    "tpu.trace_stop"() : () -> ()
    %cst_25 = arith.constant dense<0xFF800000> : vector<2x8xf32>
    %64 = vector.multi_reduction <maximumf>, %63, %cst_25 [2] : vector<2x8x8xf32> to vector<2x8xf32>
    %65 = vector.shape_cast %64 : vector<2x8xf32> to vector<2x8x1xf32>
    %66 = vector.broadcast %65 : vector<2x8x1xf32> to vector<2x8x8xf32>
    %67 = arith.subf %63, %66 : vector<2x8x8xf32>
    %68 = math.exp %67 : vector<2x8x8xf32>
    %cst_26 = arith.constant dense<0.000000e+00> : vector<2x8xf32>
    %69 = vector.multi_reduction <add>, %68, %cst_26 [2] : vector<2x8x8xf32> to vector<2x8xf32>
    %70 = vector.shape_cast %69 : vector<2x8xf32> to vector<2x8x1xf32>
    %71 = tpu.reciprocal %70 {approx = true} : vector<2x8x1xf32> -> vector<2x8x1xf32>
    %72 = vector.broadcast %71 : vector<2x8x1xf32> to vector<2x8x8xf32>
    %73 = arith.mulf %68, %72 : vector<2x8x8xf32>
    "tpu.trace_start"() <{level = 10 : i32, message = "bnm,bmd->bnd"}> : () -> ()
    %cst_27 = arith.constant dense<0.000000e+00> : vector<2x8x16xf32>
    %74 = tpu.matmul %73, %62, %cst_27 {dimension_numbers = #tpu.dot_dimension_numbers<[2], [1], [1], [2], [0, 0, 0, 1, 1, 2], [0], [0]>} : vector<2x8x8xf32>, vector<2x8x16xf32>, vector<2x8x16xf32> -> vector<2x8x16xf32>
    "tpu.trace_stop"() : () -> ()
    %75 = vector.shape_cast %74 : vector<2x8x16xf32> to vector<16x16xf32>
    %76 = vector.extract_strided_slice %41 {offsets = [16, 0], sizes = [16, 32], strides = [1, 1]} : vector<32x32xf32> to vector<16x32xf32>
    %cst_28 = arith.constant dense<0.000000e+00> : vector<16x32xf32>
    %77 = tpu.matmul %75, %76, %cst_28 {dimension_numbers = #tpu.dot_dimension_numbers<[1], [0], [0], [1], [0, 0, 1, 1], [], []>} : vector<16x16xf32>, vector<16x32xf32>, vector<16x32xf32> -> vector<16x32xf32>
    %78 = arith.addf %59, %77 : vector<16x32xf32>
    %c2 = arith.constant 2 : index
    %c0_29 = arith.constant 0 : index
    %79 = vector.load %arg3[%c2, %c0_29] : memref<13x32xf32, #tpu.memory_space<vmem>>, vector<1x32xf32>
    %80 = vector.broadcast %79 : vector<1x32xf32> to vector<16x32xf32>
    %81 = arith.addf %78, %80 : vector<16x32xf32>
    %82 = arith.addf %81, %4 : vector<16x32xf32>
    %c3 = arith.constant 3 : index
    %c0_30 = arith.constant 0 : index
    %83 = vector.load %arg3[%c3, %c0_30] : memref<13x32xf32, #tpu.memory_space<vmem>>, vector<1x32xf32>
    %c4 = arith.constant 4 : index
    %c0_31 = arith.constant 0 : index
    %84 = vector.load %arg3[%c4, %c0_31] : memref<13x32xf32, #tpu.memory_space<vmem>>, vector<1x32xf32>
    %cst_32 = arith.constant dense<0.000000e+00> : vector<16xf32>
    %85 = vector.multi_reduction <add>, %82, %cst_32 [1] : vector<16x32xf32> to vector<16xf32>
    %86 = vector.shape_cast %85 : vector<16xf32> to vector<16x1xf32>
    %cst_33 = arith.constant 3.200000e+01 : f32
    %87 = vector.broadcast %cst_33 : f32 to vector<16x1xf32>
    %88 = arith.divf %86, %87 : vector<16x1xf32>
    %89 = vector.broadcast %88 : vector<16x1xf32> to vector<16x32xf32>
    %90 = arith.subf %82, %89 : vector<16x32xf32>
    %91 = arith.mulf %90, %90 : vector<16x32xf32>
    %cst_34 = arith.constant dense<0.000000e+00> : vector<16xf32>
    %92 = vector.multi_reduction <add>, %91, %cst_34 [1] : vector<16x32xf32> to vector<16xf32>
    %93 = vector.shape_cast %92 : vector<16xf32> to vector<16x1xf32>
    %cst_35 = arith.constant 3.200000e+01 : f32
    %94 = vector.broadcast %cst_35 : f32 to vector<16x1xf32>
    %95 = arith.divf %93, %94 : vector<16x1xf32>
    %96 = vector.broadcast %88 : vector<16x1xf32> to vector<16x32xf32>
    %97 = arith.subf %82, %96 : vector<16x32xf32>
    %cst_36 = arith.constant 9.99999974E-6 : f32
    %98 = vector.broadcast %cst_36 : f32 to vector<16x1xf32>
    %99 = arith.addf %95, %98 : vector<16x1xf32>
    %100 = math.rsqrt %99 : vector<16x1xf32>
    %101 = vector.broadcast %100 : vector<16x1xf32> to vector<16x32xf32>
    %102 = arith.mulf %97, %101 : vector<16x32xf32>
    %103 = vector.broadcast %83 : vector<1x32xf32> to vector<16x32xf32>
    %104 = arith.mulf %102, %103 : vector<16x32xf32>
    %105 = vector.broadcast %84 : vector<1x32xf32> to vector<16x32xf32>
    %106 = arith.addf %104, %105 : vector<16x32xf32>
    %c0_37 = arith.constant 0 : index
    %c0_38 = arith.constant 0 : index
    %c0_39 = arith.constant 0 : index
    %107 = vector.load %arg6[%c0_37, %c0_38, %c0_39] : memref<2x32x64xf32, #tpu.memory_space<vmem>>, vector<1x32x64xf32>
    %108 = vector.shape_cast %107 : vector<1x32x64xf32> to vector<32x64xf32>
    %cst_40 = arith.constant dense<0.000000e+00> : vector<16x64xf32>
    %109 = tpu.matmul %106, %108, %cst_40 {dimension_numbers = #tpu.dot_dimension_numbers<[1], [0], [0], [1], [0, 0, 1, 1], [], []>} : vector<16x32xf32>, vector<32x64xf32>, vector<16x64xf32> -> vector<16x64xf32>
    %c0_41 = arith.constant 0 : index
    %c0_42 = arith.constant 0 : index
    %110 = vector.load %arg7[%c0_41, %c0_42] : memref<2x64xf32, #tpu.memory_space<vmem>>, vector<1x64xf32>
    %111 = vector.broadcast %110 : vector<1x64xf32> to vector<16x64xf32>
    %112 = arith.addf %109, %111 : vector<16x64xf32>
    %cst_43 = arith.constant 5.000000e-01 : f32
    %113 = vector.broadcast %cst_43 : f32 to vector<16x64xf32>
    %114 = arith.mulf %113, %112 : vector<16x64xf32>
    %cst_44 = arith.constant 0.707106769 : f32
    %115 = vector.broadcast %cst_44 : f32 to vector<16x64xf32>
    %116 = arith.mulf %112, %115 : vector<16x64xf32>
    %117 = math.erf %116 : vector<16x64xf32>
    %cst_45 = arith.constant 1.000000e+00 : f32
    %118 = vector.broadcast %cst_45 : f32 to vector<16x64xf32>
    %119 = arith.addf %118, %117 : vector<16x64xf32>
    %120 = arith.mulf %114, %119 : vector<16x64xf32>
    %c0_46 = arith.constant 0 : index
    %c0_47 = arith.constant 0 : index
    %c0_48 = arith.constant 0 : index
    %121 = vector.load %arg8[%c0_46, %c0_47, %c0_48] : memref<2x64x32xf32, #tpu.memory_space<vmem>>, vector<1x64x32xf32>
    %122 = vector.shape_cast %121 : vector<1x64x32xf32> to vector<64x32xf32>
    %cst_49 = arith.constant dense<0.000000e+00> : vector<16x32xf32>
    %123 = tpu.matmul %120, %122, %cst_49 {dimension_numbers = #tpu.dot_dimension_numbers<[1], [0], [0], [1], [0, 0, 1, 1], [], []>} : vector<16x64xf32>, vector<64x32xf32>, vector<16x32xf32> -> vector<16x32xf32>
    %c5 = arith.constant 5 : index
    %c0_50 = arith.constant 0 : index
    %124 = vector.load %arg3[%c5, %c0_50] : memref<13x32xf32, #tpu.memory_space<vmem>>, vector<1x32xf32>
    %125 = vector.broadcast %124 : vector<1x32xf32> to vector<16x32xf32>
    %126 = arith.addf %123, %125 : vector<16x32xf32>
    %127 = arith.addf %126, %82 : vector<16x32xf32>
    %c6 = arith.constant 6 : index
    %c0_51 = arith.constant 0 : index
    %128 = vector.load %arg3[%c6, %c0_51] : memref<13x32xf32, #tpu.memory_space<vmem>>, vector<1x32xf32>
    %c7 = arith.constant 7 : index
    %c0_52 = arith.constant 0 : index
    %129 = vector.load %arg3[%c7, %c0_52] : memref<13x32xf32, #tpu.memory_space<vmem>>, vector<1x32xf32>
    %cst_53 = arith.constant dense<0.000000e+00> : vector<16xf32>
    %130 = vector.multi_reduction <add>, %127, %cst_53 [1] : vector<16x32xf32> to vector<16xf32>
    %131 = vector.shape_cast %130 : vector<16xf32> to vector<16x1xf32>
    %cst_54 = arith.constant 3.200000e+01 : f32
    %132 = vector.broadcast %cst_54 : f32 to vector<16x1xf32>
    %133 = arith.divf %131, %132 : vector<16x1xf32>
    %134 = vector.broadcast %133 : vector<16x1xf32> to vector<16x32xf32>
    %135 = arith.subf %127, %134 : vector<16x32xf32>
    %136 = arith.mulf %135, %135 : vector<16x32xf32>
    %cst_55 = arith.constant dense<0.000000e+00> : vector<16xf32>
    %137 = vector.multi_reduction <add>, %136, %cst_55 [1] : vector<16x32xf32> to vector<16xf32>
    %138 = vector.shape_cast %137 : vector<16xf32> to vector<16x1xf32>
    %cst_56 = arith.constant 3.200000e+01 : f32
    %139 = vector.broadcast %cst_56 : f32 to vector<16x1xf32>
    %140 = arith.divf %138, %139 : vector<16x1xf32>
    %141 = vector.broadcast %133 : vector<16x1xf32> to vector<16x32xf32>
    %142 = arith.subf %127, %141 : vector<16x32xf32>
    %cst_57 = arith.constant 9.99999974E-6 : f32
    %143 = vector.broadcast %cst_57 : f32 to vector<16x1xf32>
    %144 = arith.addf %140, %143 : vector<16x1xf32>
    %145 = math.rsqrt %144 : vector<16x1xf32>
    %146 = vector.broadcast %145 : vector<16x1xf32> to vector<16x32xf32>
    %147 = arith.mulf %142, %146 : vector<16x32xf32>
    %148 = vector.broadcast %128 : vector<1x32xf32> to vector<16x32xf32>
    %149 = arith.mulf %147, %148 : vector<16x32xf32>
    %150 = vector.broadcast %129 : vector<1x32xf32> to vector<16x32xf32>
    %151 = arith.addf %149, %150 : vector<16x32xf32>
    %c1_58 = arith.constant 1 : index
    %c0_59 = arith.constant 0 : index
    %c0_60 = arith.constant 0 : index
    %152 = vector.load %arg4[%c1_58, %c0_59, %c0_60] : memref<2x32x96xf32, #tpu.memory_space<vmem>>, vector<1x32x96xf32>
    %153 = vector.shape_cast %152 : vector<1x32x96xf32> to vector<32x96xf32>
    %cst_61 = arith.constant dense<0.000000e+00> : vector<16x96xf32>
    %154 = tpu.matmul %151, %153, %cst_61 {dimension_numbers = #tpu.dot_dimension_numbers<[1], [0], [0], [1], [0, 0, 1, 1], [], []>} : vector<16x32xf32>, vector<32x96xf32>, vector<16x96xf32> -> vector<16x96xf32>
    %155 = vector.extract_strided_slice %154 {offsets = [0, 0], sizes = [16, 32], strides = [1, 1]} : vector<16x96xf32> to vector<16x32xf32>
    %cst_62 = arith.constant 2.500000e-01 : f32
    %156 = vector.broadcast %cst_62 : f32 to vector<16x32xf32>
    %157 = arith.mulf %155, %156 : vector<16x32xf32>
    %158 = vector.extract_strided_slice %154 {offsets = [0, 32], sizes = [16, 32], strides = [1, 1]} : vector<16x96xf32> to vector<16x32xf32>
    %159 = vector.extract_strided_slice %154 {offsets = [0, 64], sizes = [16, 32], strides = [1, 1]} : vector<16x96xf32> to vector<16x32xf32>
    %160 = vector.shape_cast %157 : vector<16x32xf32> to vector<2x8x32xf32>
    %161 = vector.shape_cast %158 : vector<16x32xf32> to vector<2x8x32xf32>
    %162 = vector.shape_cast %159 : vector<16x32xf32> to vector<2x8x32xf32>
    %c1_63 = arith.constant 1 : index
    %c0_64 = arith.constant 0 : index
    %c0_65 = arith.constant 0 : index
    %163 = vector.load %arg5[%c1_63, %c0_64, %c0_65] : memref<2x32x32xf32, #tpu.memory_space<vmem>>, vector<1x32x32xf32>
    %164 = vector.shape_cast %163 : vector<1x32x32xf32> to vector<32x32xf32>
    %165 = vector.extract_strided_slice %160 {offsets = [0, 0, 0], sizes = [2, 8, 16], strides = [1, 1, 1]} : vector<2x8x32xf32> to vector<2x8x16xf32>
    %166 = vector.extract_strided_slice %161 {offsets = [0, 0, 0], sizes = [2, 8, 16], strides = [1, 1, 1]} : vector<2x8x32xf32> to vector<2x8x16xf32>
    %167 = vector.extract_strided_slice %162 {offsets = [0, 0, 0], sizes = [2, 8, 16], strides = [1, 1, 1]} : vector<2x8x32xf32> to vector<2x8x16xf32>
    "tpu.trace_start"() <{level = 10 : i32, message = "bnd,bmd->bnm"}> : () -> ()
    %cst_66 = arith.constant dense<0.000000e+00> : vector<2x8x8xf32>
    %168 = tpu.matmul %165, %166, %cst_66 {dimension_numbers = #tpu.dot_dimension_numbers<[2], [2], [1], [1], [0, 0, 0, 1, 1, 1], [0], [0]>} : vector<2x8x16xf32>, vector<2x8x16xf32>, vector<2x8x8xf32> -> vector<2x8x8xf32>
    "tpu.trace_stop"() : () -> ()
    %cst_67 = arith.constant dense<0xFF800000> : vector<2x8xf32>
    %169 = vector.multi_reduction <maximumf>, %168, %cst_67 [2] : vector<2x8x8xf32> to vector<2x8xf32>
    %170 = vector.shape_cast %169 : vector<2x8xf32> to vector<2x8x1xf32>
    %171 = vector.broadcast %170 : vector<2x8x1xf32> to vector<2x8x8xf32>
    %172 = arith.subf %168, %171 : vector<2x8x8xf32>
    %173 = math.exp %172 : vector<2x8x8xf32>
    %cst_68 = arith.constant dense<0.000000e+00> : vector<2x8xf32>
    %174 = vector.multi_reduction <add>, %173, %cst_68 [2] : vector<2x8x8xf32> to vector<2x8xf32>
    %175 = vector.shape_cast %174 : vector<2x8xf32> to vector<2x8x1xf32>
    %176 = tpu.reciprocal %175 {approx = true} : vector<2x8x1xf32> -> vector<2x8x1xf32>
    %177 = vector.broadcast %176 : vector<2x8x1xf32> to vector<2x8x8xf32>
    %178 = arith.mulf %173, %177 : vector<2x8x8xf32>
    "tpu.trace_start"() <{level = 10 : i32, message = "bnm,bmd->bnd"}> : () -> ()
    %cst_69 = arith.constant dense<0.000000e+00> : vector<2x8x16xf32>
    %179 = tpu.matmul %178, %167, %cst_69 {dimension_numbers = #tpu.dot_dimension_numbers<[2], [1], [1], [2], [0, 0, 0, 1, 1, 2], [0], [0]>} : vector<2x8x8xf32>, vector<2x8x16xf32>, vector<2x8x16xf32> -> vector<2x8x16xf32>
    "tpu.trace_stop"() : () -> ()
    %180 = vector.shape_cast %179 : vector<2x8x16xf32> to vector<16x16xf32>
    %181 = vector.extract_strided_slice %164 {offsets = [0, 0], sizes = [16, 32], strides = [1, 1]} : vector<32x32xf32> to vector<16x32xf32>
    %cst_70 = arith.constant dense<0.000000e+00> : vector<16x32xf32>
    %182 = tpu.matmul %180, %181, %cst_70 {dimension_numbers = #tpu.dot_dimension_numbers<[1], [0], [0], [1], [0, 0, 1, 1], [], []>} : vector<16x16xf32>, vector<16x32xf32>, vector<16x32xf32> -> vector<16x32xf32>
    %183 = vector.extract_strided_slice %160 {offsets = [0, 0, 16], sizes = [2, 8, 16], strides = [1, 1, 1]} : vector<2x8x32xf32> to vector<2x8x16xf32>
    %184 = vector.extract_strided_slice %161 {offsets = [0, 0, 16], sizes = [2, 8, 16], strides = [1, 1, 1]} : vector<2x8x32xf32> to vector<2x8x16xf32>
    %185 = vector.extract_strided_slice %162 {offsets = [0, 0, 16], sizes = [2, 8, 16], strides = [1, 1, 1]} : vector<2x8x32xf32> to vector<2x8x16xf32>
    "tpu.trace_start"() <{level = 10 : i32, message = "bnd,bmd->bnm"}> : () -> ()
    %cst_71 = arith.constant dense<0.000000e+00> : vector<2x8x8xf32>
    %186 = tpu.matmul %183, %184, %cst_71 {dimension_numbers = #tpu.dot_dimension_numbers<[2], [2], [1], [1], [0, 0, 0, 1, 1, 1], [0], [0]>} : vector<2x8x16xf32>, vector<2x8x16xf32>, vector<2x8x8xf32> -> vector<2x8x8xf32>
    "tpu.trace_stop"() : () -> ()
    %cst_72 = arith.constant dense<0xFF800000> : vector<2x8xf32>
    %187 = vector.multi_reduction <maximumf>, %186, %cst_72 [2] : vector<2x8x8xf32> to vector<2x8xf32>
    %188 = vector.shape_cast %187 : vector<2x8xf32> to vector<2x8x1xf32>
    %189 = vector.broadcast %188 : vector<2x8x1xf32> to vector<2x8x8xf32>
    %190 = arith.subf %186, %189 : vector<2x8x8xf32>
    %191 = math.exp %190 : vector<2x8x8xf32>
    %cst_73 = arith.constant dense<0.000000e+00> : vector<2x8xf32>
    %192 = vector.multi_reduction <add>, %191, %cst_73 [2] : vector<2x8x8xf32> to vector<2x8xf32>
    %193 = vector.shape_cast %192 : vector<2x8xf32> to vector<2x8x1xf32>
    %194 = tpu.reciprocal %193 {approx = true} : vector<2x8x1xf32> -> vector<2x8x1xf32>
    %195 = vector.broadcast %194 : vector<2x8x1xf32> to vector<2x8x8xf32>
    %196 = arith.mulf %191, %195 : vector<2x8x8xf32>
    "tpu.trace_start"() <{level = 10 : i32, message = "bnm,bmd->bnd"}> : () -> ()
    %cst_74 = arith.constant dense<0.000000e+00> : vector<2x8x16xf32>
    %197 = tpu.matmul %196, %185, %cst_74 {dimension_numbers = #tpu.dot_dimension_numbers<[2], [1], [1], [2], [0, 0, 0, 1, 1, 2], [0], [0]>} : vector<2x8x8xf32>, vector<2x8x16xf32>, vector<2x8x16xf32> -> vector<2x8x16xf32>
    "tpu.trace_stop"() : () -> ()
    %198 = vector.shape_cast %197 : vector<2x8x16xf32> to vector<16x16xf32>
    %199 = vector.extract_strided_slice %164 {offsets = [16, 0], sizes = [16, 32], strides = [1, 1]} : vector<32x32xf32> to vector<16x32xf32>
    %cst_75 = arith.constant dense<0.000000e+00> : vector<16x32xf32>
    %200 = tpu.matmul %198, %199, %cst_75 {dimension_numbers = #tpu.dot_dimension_numbers<[1], [0], [0], [1], [0, 0, 1, 1], [], []>} : vector<16x16xf32>, vector<16x32xf32>, vector<16x32xf32> -> vector<16x32xf32>
    %201 = arith.addf %182, %200 : vector<16x32xf32>
    %c8 = arith.constant 8 : index
    %c0_76 = arith.constant 0 : index
    %202 = vector.load %arg3[%c8, %c0_76] : memref<13x32xf32, #tpu.memory_space<vmem>>, vector<1x32xf32>
    %203 = vector.broadcast %202 : vector<1x32xf32> to vector<16x32xf32>
    %204 = arith.addf %201, %203 : vector<16x32xf32>
    %205 = arith.addf %204, %127 : vector<16x32xf32>
    %c9 = arith.constant 9 : index
    %c0_77 = arith.constant 0 : index
    %206 = vector.load %arg3[%c9, %c0_77] : memref<13x32xf32, #tpu.memory_space<vmem>>, vector<1x32xf32>
    %c10 = arith.constant 10 : index
    %c0_78 = arith.constant 0 : index
    %207 = vector.load %arg3[%c10, %c0_78] : memref<13x32xf32, #tpu.memory_space<vmem>>, vector<1x32xf32>
    %cst_79 = arith.constant dense<0.000000e+00> : vector<16xf32>
    %208 = vector.multi_reduction <add>, %205, %cst_79 [1] : vector<16x32xf32> to vector<16xf32>
    %209 = vector.shape_cast %208 : vector<16xf32> to vector<16x1xf32>
    %cst_80 = arith.constant 3.200000e+01 : f32
    %210 = vector.broadcast %cst_80 : f32 to vector<16x1xf32>
    %211 = arith.divf %209, %210 : vector<16x1xf32>
    %212 = vector.broadcast %211 : vector<16x1xf32> to vector<16x32xf32>
    %213 = arith.subf %205, %212 : vector<16x32xf32>
    %214 = arith.mulf %213, %213 : vector<16x32xf32>
    %cst_81 = arith.constant dense<0.000000e+00> : vector<16xf32>
    %215 = vector.multi_reduction <add>, %214, %cst_81 [1] : vector<16x32xf32> to vector<16xf32>
    %216 = vector.shape_cast %215 : vector<16xf32> to vector<16x1xf32>
    %cst_82 = arith.constant 3.200000e+01 : f32
    %217 = vector.broadcast %cst_82 : f32 to vector<16x1xf32>
    %218 = arith.divf %216, %217 : vector<16x1xf32>
    %219 = vector.broadcast %211 : vector<16x1xf32> to vector<16x32xf32>
    %220 = arith.subf %205, %219 : vector<16x32xf32>
    %cst_83 = arith.constant 9.99999974E-6 : f32
    %221 = vector.broadcast %cst_83 : f32 to vector<16x1xf32>
    %222 = arith.addf %218, %221 : vector<16x1xf32>
    %223 = math.rsqrt %222 : vector<16x1xf32>
    %224 = vector.broadcast %223 : vector<16x1xf32> to vector<16x32xf32>
    %225 = arith.mulf %220, %224 : vector<16x32xf32>
    %226 = vector.broadcast %206 : vector<1x32xf32> to vector<16x32xf32>
    %227 = arith.mulf %225, %226 : vector<16x32xf32>
    %228 = vector.broadcast %207 : vector<1x32xf32> to vector<16x32xf32>
    %229 = arith.addf %227, %228 : vector<16x32xf32>
    %c1_84 = arith.constant 1 : index
    %c0_85 = arith.constant 0 : index
    %c0_86 = arith.constant 0 : index
    %230 = vector.load %arg6[%c1_84, %c0_85, %c0_86] : memref<2x32x64xf32, #tpu.memory_space<vmem>>, vector<1x32x64xf32>
    %231 = vector.shape_cast %230 : vector<1x32x64xf32> to vector<32x64xf32>
    %cst_87 = arith.constant dense<0.000000e+00> : vector<16x64xf32>
    %232 = tpu.matmul %229, %231, %cst_87 {dimension_numbers = #tpu.dot_dimension_numbers<[1], [0], [0], [1], [0, 0, 1, 1], [], []>} : vector<16x32xf32>, vector<32x64xf32>, vector<16x64xf32> -> vector<16x64xf32>
    %c1_88 = arith.constant 1 : index
    %c0_89 = arith.constant 0 : index
    %233 = vector.load %arg7[%c1_88, %c0_89] : memref<2x64xf32, #tpu.memory_space<vmem>>, vector<1x64xf32>
    %234 = vector.broadcast %233 : vector<1x64xf32> to vector<16x64xf32>
    %235 = arith.addf %232, %234 : vector<16x64xf32>
    %cst_90 = arith.constant 5.000000e-01 : f32
    %236 = vector.broadcast %cst_90 : f32 to vector<16x64xf32>
    %237 = arith.mulf %236, %235 : vector<16x64xf32>
    %cst_91 = arith.constant 0.707106769 : f32
    %238 = vector.broadcast %cst_91 : f32 to vector<16x64xf32>
    %239 = arith.mulf %235, %238 : vector<16x64xf32>
    %240 = math.erf %239 : vector<16x64xf32>
    %cst_92 = arith.constant 1.000000e+00 : f32
    %241 = vector.broadcast %cst_92 : f32 to vector<16x64xf32>
    %242 = arith.addf %241, %240 : vector<16x64xf32>
    %243 = arith.mulf %237, %242 : vector<16x64xf32>
    %c1_93 = arith.constant 1 : index
    %c0_94 = arith.constant 0 : index
    %c0_95 = arith.constant 0 : index
    %244 = vector.load %arg8[%c1_93, %c0_94, %c0_95] : memref<2x64x32xf32, #tpu.memory_space<vmem>>, vector<1x64x32xf32>
    %245 = vector.shape_cast %244 : vector<1x64x32xf32> to vector<64x32xf32>
    %cst_96 = arith.constant dense<0.000000e+00> : vector<16x32xf32>
    %246 = tpu.matmul %243, %245, %cst_96 {dimension_numbers = #tpu.dot_dimension_numbers<[1], [0], [0], [1], [0, 0, 1, 1], [], []>} : vector<16x64xf32>, vector<64x32xf32>, vector<16x32xf32> -> vector<16x32xf32>
    %c11 = arith.constant 11 : index
    %c0_97 = arith.constant 0 : index
    %247 = vector.load %arg3[%c11, %c0_97] : memref<13x32xf32, #tpu.memory_space<vmem>>, vector<1x32xf32>
    %248 = vector.broadcast %247 : vector<1x32xf32> to vector<16x32xf32>
    %249 = arith.addf %246, %248 : vector<16x32xf32>
    %250 = arith.addf %249, %205 : vector<16x32xf32>
    %c12 = arith.constant 12 : index
    %c0_98 = arith.constant 0 : index
    %251 = vector.load %arg3[%c12, %c0_98] : memref<13x32xf32, #tpu.memory_space<vmem>>, vector<1x32xf32>
    %cst_99 = arith.constant dense<0.000000e+00> : vector<16xf32>
    %252 = vector.multi_reduction <add>, %250, %cst_99 [1] : vector<16x32xf32> to vector<16xf32>
    %253 = vector.shape_cast %252 : vector<16xf32> to vector<16x1xf32>
    %cst_100 = arith.constant 3.200000e+01 : f32
    %254 = vector.broadcast %cst_100 : f32 to vector<16x1xf32>
    %255 = arith.divf %253, %254 : vector<16x1xf32>
    %256 = vector.broadcast %255 : vector<16x1xf32> to vector<16x32xf32>
    %257 = arith.subf %250, %256 : vector<16x32xf32>
    %258 = arith.mulf %257, %257 : vector<16x32xf32>
    %cst_101 = arith.constant dense<0.000000e+00> : vector<16xf32>
    %259 = vector.multi_reduction <add>, %258, %cst_101 [1] : vector<16x32xf32> to vector<16xf32>
    %260 = vector.shape_cast %259 : vector<16xf32> to vector<16x1xf32>
    %cst_102 = arith.constant 3.200000e+01 : f32
    %261 = vector.broadcast %cst_102 : f32 to vector<16x1xf32>
    %262 = arith.divf %260, %261 : vector<16x1xf32>
    %263 = vector.broadcast %255 : vector<16x1xf32> to vector<16x32xf32>
    %264 = arith.subf %250, %263 : vector<16x32xf32>
    %cst_103 = arith.constant 9.99999974E-6 : f32
    %265 = vector.broadcast %cst_103 : f32 to vector<16x1xf32>
    %266 = arith.addf %262, %265 : vector<16x1xf32>
    %267 = math.rsqrt %266 : vector<16x1xf32>
    %268 = vector.broadcast %267 : vector<16x1xf32> to vector<16x32xf32>
    %269 = arith.mulf %264, %268 : vector<16x32xf32>
    %270 = vector.broadcast %251 : vector<1x32xf32> to vector<16x32xf32>
    %271 = arith.mulf %269, %270 : vector<16x32xf32>
    %cst_104 = arith.constant 0.000000e+00 : f32
    %272 = vector.broadcast %cst_104 : f32 to vector<16x32xf32>
    %273 = arith.addf %271, %272 : vector<16x32xf32>
    %c0_105 = arith.constant 0 : index
    %c0_106 = arith.constant 0 : index
    %274 = vector.load %arg9[%c0_105, %c0_106] : memref<32x128xf32, #tpu.memory_space<vmem>>, vector<32x128xf32>
    %cst_107 = arith.constant dense<0.000000e+00> : vector<16x128xf32>
    %275 = tpu.matmul %273, %274, %cst_107 {dimension_numbers = #tpu.dot_dimension_numbers<[1], [0], [0], [1], [0, 0, 1, 1], [], []>} : vector<16x32xf32>, vector<32x128xf32>, vector<16x128xf32> -> vector<16x128xf32>
    %c0_108 = arith.constant 0 : index
    %c0_109 = arith.constant 0 : index
    %276 = vector.load %arg10[%c0_108, %c0_109] : memref<1x128xf32, #tpu.memory_space<vmem>>, vector<1x128xf32>
    %277 = vector.broadcast %276 : vector<1x128xf32> to vector<16x128xf32>
    %278 = arith.addf %275, %277 : vector<16x128xf32>
    %c0_110 = arith.constant 0 : index
    %c0_111 = arith.constant 0 : index
    %279 = vector.load %arg11[%c0_110, %c0_111] : memref<16x128xf32, #tpu.memory_space<vmem>>, vector<16x128xf32>
    tpu.vector_store %arg11[%c0_110, %c0_111], %278 {strides = array<i32>} : memref<16x128xf32, #tpu.memory_space<vmem>>, vector<16x128xf32>,
    return
  }
  func.func @transform_0(%arg0: i32) -> (i32, i32) {
    %c0_i32 = arith.constant 0 : i32
    %c0_i32_0 = arith.constant 0 : i32
    %c0_i32_1 = arith.constant 0 : i32
    return %c0_i32, %c0_i32_0 : i32, i32
  }
  func.func @transform_1(%arg0: i32) -> (i32, i32) {
    %c0_i32 = arith.constant 0 : i32
    %c0_i32_0 = arith.constant 0 : i32
    %c0_i32_1 = arith.constant 0 : i32
    return %c0_i32, %c0_i32_0 : i32, i32
  }
  func.func @transform_2(%arg0: i32) -> (i32, i32) {
    %c0_i32 = arith.constant 0 : i32
    %c0_i32_0 = arith.constant 0 : i32
    %c0_i32_1 = arith.constant 0 : i32
    return %c0_i32, %c0_i32_0 : i32, i32
  }
  func.func @transform_3(%arg0: i32) -> (i32, i32, i32) {
    %c0_i32 = arith.constant 0 : i32
    %c0_i32_0 = arith.constant 0 : i32
    %c0_i32_1 = arith.constant 0 : i32
    %c0_i32_2 = arith.constant 0 : i32
    return %c0_i32, %c0_i32_0, %c0_i32_1 : i32, i32, i32
  }
  func.func @transform_4(%arg0: i32) -> (i32, i32, i32) {
    %c0_i32 = arith.constant 0 : i32
    %c0_i32_0 = arith.constant 0 : i32
    %c0_i32_1 = arith.constant 0 : i32
    %c0_i32_2 = arith.constant 0 : i32
    return %c0_i32, %c0_i32_0, %c0_i32_1 : i32, i32, i32
  }
  func.func @transform_5(%arg0: i32) -> (i32, i32, i32) {
    %c0_i32 = arith.constant 0 : i32
    %c0_i32_0 = arith.constant 0 : i32
    %c0_i32_1 = arith.constant 0 : i32
    %c0_i32_2 = arith.constant 0 : i32
    return %c0_i32, %c0_i32_0, %c0_i32_1 : i32, i32, i32
  }
  func.func @transform_6(%arg0: i32) -> (i32, i32) {
    %c0_i32 = arith.constant 0 : i32
    %c0_i32_0 = arith.constant 0 : i32
    %c0_i32_1 = arith.constant 0 : i32
    return %c0_i32, %c0_i32_0 : i32, i32
  }
  func.func @transform_7(%arg0: i32) -> (i32, i32, i32) {
    %c0_i32 = arith.constant 0 : i32
    %c0_i32_0 = arith.constant 0 : i32
    %c0_i32_1 = arith.constant 0 : i32
    %c0_i32_2 = arith.constant 0 : i32
    return %c0_i32, %c0_i32_0, %c0_i32_1 : i32, i32, i32
  }
  func.func @transform_8(%arg0: i32) -> (i32, i32) {
    %c0_i32 = arith.constant 0 : i32
    %c0_i32_0 = arith.constant 0 : i32
    %c0_i32_1 = arith.constant 0 : i32
    return %c0_i32, %c0_i32_0 : i32, i32
  }
  func.func @transform_9(%arg0: i32) -> (i32, i32) {
    %c0_i32 = arith.constant 0 : i32
    %c0_i32_0 = arith.constant 0 : i32
    %c0_i32_1 = arith.constant 0 : i32
    return %c0_i32, %c0_i32_0 : i32, i32
  }
  func.func @transform_10(%arg0: i32) -> (i32, i32) {
    %c0_i32 = arith.constant 0 : i32
    %c0_i32_0 = arith.constant 0 : i32
    %c0_i32_1 = arith.constant 0 : i32
    return %c0_i32, %c0_i32_0 : i32, i32
  }
}

</mosaic_0001>

<bundles_post_ra>
// kernel: tpu_custom_call.1
= control target key start
LH: loop header
LB: loop body
LE: loop exit
PB: predicated region body
PF: predicated region fallthrough
CT: control target
= control target key end

     0   :  { %15 = vsyncpa [#allocation3], 0  ;;  %s3822_s0 = inlined_call_operand.hbm [shape: f32[16,32], index: 0, kind: input, shape index: {}]   ;;  %s3823_s1 = inlined_call_operand.hbm [shape: f32[16,32], index: 1, kind: input, shape index: {}]   ;;  %s3824_s2 = inlined_call_operand.hbm [shape: f32[13,32], index: 2, kind: input, shape index: {}]   ;;  %s3825_s3 = inlined_call_operand.vmem [shape: f32[2,32,96], index: 3, kind: input, shape index: {}]   ;;  %s3826_s4 = inlined_call_operand.vmem [shape: f32[2,32,32], index: 4, kind: input, shape index: {}]   ;;  %s3827_s5 = inlined_call_operand.vmem [shape: f32[2,32,64], index: 5, kind: input, shape index: {}]   ;;  %s3828_s6 = inlined_call_operand.vmem [shape: f32[2,64], index: 6, kind: input, shape index: {}]   ;;  %s3829_s7 = inlined_call_operand.vmem [shape: f32[2,64,32], index: 7, kind: input, shape index: {}]   ;;  %s3830_s8 = inlined_call_operand.hbm [shape: f32[32,128], index: 8, kind: input, shape index: {}]   ;;  %s3831_s9 = inlined_call_operand.vmem [shape: f32[1,128], index: 9, kind: input, shape index: {}]   ;;  %s3832_s10 = inlined_call_operand.hbm [shape: f32[16,128], index: 10, kind: output, shape index: {}]  }
   0x1   :  { %16 = vsyncpa [#allocation6], 0 }
   0x2   :  { %17 = vsyncpa [#allocation9], 0 }
   0x3   :  { %18 = vsyncpa [#allocation4], 0  ;;  %s3317_s13 = smov [#allocation5]   ;;  %s3318_s15 = smov [#allocation2]  }
   0x4   :  { %s36_s14 = sshll.u32 %s3317_s13, 4  ;;  %s24_s16 = sshll.u32 %s3318_s15, 4  ;;  %s37_s14 = int_to_ptr.vmem [resolvable:$true] %s36_s14  ;;  %s3386_s16 = int_to_ptr.vmem [resolvable:$true] %s24_s16 }
   0x5   :  { %s3199_s19 = scalar_lea.hbm %s3823_s1, 256 }
   0x6   :  { %p3200_p0 = scmp.ne.s32.totalorder %s3823_s1, %s3199_s19  ;;  %p3203_p1 = scmp.lt.u32.totalorder %s3199_s19, %s3823_s1 }
   0x8   :  { %p3205_p2 = pnand %p3203_p1, %p3200_p0 }
   0xa   :  { %3208 = shalt.err (!%p3205_p2)
}
   0xb   :  { %s3209_s24 = scalar_lea.vmem %s37_s14, 256  ;;  %p3214_p4 = scmp.lt.s32.totalorder %s37_s14, %s37_s14 }
   0xc   :  { %p3210_p3 = scmp.ne.s32.totalorder %s37_s14, %s3209_s24  ;;  %p3215_p5 = scmp.lt.s32.totalorder %s3209_s24, %s3209_s24 }
   0xe   :  { %p3216_p6 = por %p3215_p5, %p3214_p4 }
  0x10   :  { %p3217_p7 = pnand %p3216_p6, %p3210_p3 }
  0x12   :  { %3220 = shalt.err (!%p3217_p7)
}
  0x13   :  { %s3319_s25 = smov 128   ;;  %s3320_s26 = smov 8  }
  0x14   :  { %42 = dma.hbm_to_vmem [thread:$0]  %s3823_s1, 256, %s37_s14, [#allocation6], %s3319_s25, %s3319_s25, %s3320_s26  }
  0x15   :  { %s3221_s11 = scalar_lea.hbm %s3822_s0, 256 }
  0x16   :  { %p3222_p8 = scmp.ne.s32.totalorder %s3822_s0, %s3221_s11  ;;  %p3225_p9 = scmp.lt.u32.totalorder %s3221_s11, %s3822_s0 }
  0x18   :  { %p3227_p10 = pnand %p3225_p9, %p3222_p8 }
  0x1a   :  { %3230 = shalt.err (!%p3227_p10)
}
  0x1b   :  { %s3231_s18 = scalar_lea.vmem %s3386_s16, 256  ;;  %p3236_p12 = scmp.lt.s32.totalorder %s3386_s16, %s3386_s16 }
  0x1c   :  { %p3232_p11 = scmp.ne.s32.totalorder %s3386_s16, %s3231_s18  ;;  %p3237_p13 = scmp.lt.s32.totalorder %s3231_s18, %s3231_s18 }
  0x1e   :  { %p3238_p0 = por %p3237_p13, %p3236_p12 }
  0x20   :  { %p3239_p1 = pnand %p3238_p0, %p3232_p11 }
  0x22   :  { %3242 = shalt.err (!%p3239_p1)
}
  0x23   :  { %30 = dma.hbm_to_vmem [thread:$0]  %s3822_s0, 256, %s3386_s16, [#allocation3], %s3319_s25, %s3319_s25, %s3320_s26  }
  0x24   :  { %s3321_s19 = smov [#allocation7]   ;;  %s3322_s21 = smov [#allocation8]  }
  0x25   :  { %s48_s20 = sshll.u32 %s3321_s19, 4  ;;  %s70_s22 = sshll.u32 %s3322_s21, 4  ;;  %s49_s20 = int_to_ptr.vmem [resolvable:$true] %s48_s20  ;;  %s3423_s22 = int_to_ptr.vmem [resolvable:$true] %s70_s22 }
  0x26   :  { %s3243_s27 = scalar_lea.hbm %s3824_s2, 256 }
  0x27   :  { %p3244_p2 = scmp.ne.s32.totalorder %s3824_s2, %s3243_s27  ;;  %p3247_p3 = scmp.lt.u32.totalorder %s3243_s27, %s3824_s2 }
  0x29   :  { %p3249_p4 = pnand %p3247_p3, %p3244_p2 }
  0x2b   :  { %3252 = shalt.err (!%p3249_p4)
}
  0x2c   :  { %s3253_s0 = scalar_lea.vmem %s49_s20, 256  ;;  %p3258_p6 = scmp.lt.s32.totalorder %s49_s20, %s49_s20 }
  0x2d   :  { %p3254_p5 = scmp.ne.s32.totalorder %s49_s20, %s3253_s0  ;;  %p3259_p7 = scmp.lt.s32.totalorder %s3253_s0, %s3253_s0 }
  0x2f   :  { %p3260_p8 = por %p3259_p7, %p3258_p6 }
  0x31   :  { %p3261_p9 = pnand %p3260_p8, %p3254_p5 }
  0x33   :  { %3264 = shalt.err (!%p3261_p9)
}
  0x34   :  { %54 = dma.hbm_to_vmem [thread:$0]  %s3824_s2, 256, %s49_s20, [#allocation6], %s3319_s25, %s3319_s25, %s3320_s26  }
  0x35   :  { %s3265_s17 = scalar_lea.hbm %s3830_s8, 512 }
  0x36   :  { %p3266_p10 = scmp.ne.s32.totalorder %s3830_s8, %s3265_s17  ;;  %p3269_p11 = scmp.lt.u32.totalorder %s3265_s17, %s3830_s8 }
  0x38   :  { %p3271_p12 = pnand %p3269_p11, %p3266_p10 }
  0x3a   :  { %3274 = shalt.err (!%p3271_p12)
}
  0x3b   :  { %s3275_s21 = scalar_lea.vmem %s3423_s22, 512  ;;  %p3280_p0 = scmp.lt.s32.totalorder %s3423_s22, %s3423_s22 }
  0x3c   :  { %p3276_p13 = scmp.ne.s32.totalorder %s3423_s22, %s3275_s21  ;;  %p3281_p1 = scmp.lt.s32.totalorder %s3275_s21, %s3275_s21 }
  0x3e   :  { %p3282_p2 = por %p3281_p1, %p3280_p0 }
  0x40   :  { %p3283_p3 = pnand %p3282_p2, %p3276_p13 }
  0x42   :  { %3286 = shalt.err (!%p3283_p3)
}
  0x43   :  { %76 = dma.hbm_to_vmem [thread:$0]  %s3830_s8, 512, %s3423_s22, [#allocation9], %s3319_s25, %s3319_s25, %s3320_s26  }
  0x44   :  { %3309 = dma.done.wait [#allocation3], 256  }
  0x45   :  { %3310 = vsyncadd [#allocation3], 4294967040 }
  0x46   :  { %3311 = dma.done.wait [#allocation6], 512  }
  0x47   :  { %3312 = vsyncadd [#allocation6], 4294966784 }
  0x48   :  { %3313 = dma.done.wait [#allocation9], 512  }
  0x49   :  { %3314 = vsyncadd [#allocation9], 4294966784  ;;  %v91_v0 = vld [vmem:[#allocation2] sm:$0xff]  ;;  %v95_v1 = vld [vmem:[#allocation5] sm:$0xff]  ;;  %vm101_vm0 = vcmask 261120   ;;  %v3323_v42 = vmov 0.0  }
  0x4a   :  { %v92_v2 = vld [vmem:[#allocation2 + $0x8] sm:$0xff]  ;;  %v93_v3 = vmul.f32 2.0, %v91_v0  ;;  %v96_v5 = vld [vmem:[#allocation5 + $0x8] sm:$0xff]  ;;  %v141_v20 = vld [vmem:[%s3825_s3] sm:$0xff]  ;;  %2843 = vmatprep.subr.mxu1 %v3323_v42  ;;  %vm3324_vm1 = vmmov 0   ;;  %s3325_s11 = smov 96  }
  0x4b   :  { %v94_v4 = vmul.f32 2.0, %v92_v2  ;;  %v142_v21 = vld [vmem:[%s3825_s3 + $0x8] sm:$0xff]  ;;  %v143_v22 = vld [vmem:[%s3825_s3 + $0x10] sm:$0xff]  ;;  %v144_v24 = vld [vmem:[%s3825_s3 + $0x18] sm:$0xff]  ;;  %2845 = vmatprep.mubr.msk.f32.mxu1 %vm3324_vm1, %v3323_v42  ;;  %vm235_vm2 = vcmask 130048   ;;  %vm389_vm3 = vcmask 64512  }
  0x4c   :  { %v3460_v6 = vadd.f32 %v95_v1, %v93_v3  ;;  %v3033_v23 = vpack.c.bf16 %v142_v21, %v141_v20  ;;  %v3037_v25 = vpack.c.bf16 %v144_v24, %v143_v22  ;;  %v2652_v33 = vld [vmem:[#allocation7] ss:$0 sm:$0xff]  ;;  %v2653_v35 = vld [vmem:[#allocation7 + $0x1] ss:$0 sm:$0xff]  ;;  %s3326_s0 = smov 64   ;;  %s3327_s16 = smov 80  }
  0x4d   :  { %v3462_v7 = vadd.f32 %v96_v5, %v94_v4  ;;  %s3328_s12 = smov 112   ;;  %s3329_s13 = smov 48   ;;  %vm1218_vm4 = vcmask 523264  }
  0x4e   :  { %v102_v8 = vsel %vm101_vm0, %v3460_v6, 0.0  ;;  %3034 = vmatprep.subr.bf16.mxu0 %v3033_v23  ;;  %s3330_s22 = smov [#allocation10]  }
  0x4f   :  { %103 = vadd.xlane.f32.xlu0 %v102_v8  ;;  %v105_v9 = vsel %vm101_vm0, %v3462_v7, 0.0  ;;  %3036 = vmatpush3.bf16.msra.mxu0 %v3033_v23  ;;  %s2638_s23 = sshll.u32 %s3330_s22, 4  ;;  %s2639_s23 = int_to_ptr.vmem [resolvable:$true] %s2638_s23 }
  0x50   :  { %3038 = vmatprep.subr.bf16.mxu0 %v3037_v25  ;;  %s3287_s24 = scalar_lea.vmem %s2639_s23, 256  ;;  %p3292_p5 = scmp.lt.s32.totalorder %s2639_s23, %s2639_s23 }
  0x51   :  { %p3288_p4 = scmp.ne.s32.totalorder %s2639_s23, %s3287_s24  ;;  %p3293_p6 = scmp.lt.s32.totalorder %s3287_s24, %s3287_s24 }
  0x53   :  { %106 = vadd.xlane.f32.xlu0 %v105_v9  ;;  %3040 = vmatpush3.bf16.msra.mxu0 %v3037_v25  ;;  %p3294_p7 = por %p3293_p6, %p3292_p5 }
  0x54   :  { %2863 = vmatprep.subr.mxu0 %v3323_v42 }
  0x55   :  { %p3295_p8 = pnand %p3294_p7, %p3288_p4 }
  0xdc   :  { %v104_v10 = vpop.xlane.xlu0 %103 }
  0xdd   :  { %v109_v11 = vmul.f32 0.03125, %v104_v10 }
  0xdf   :  { %v111_v12 = vsub.f32 %v3460_v6, %v109_v11 }
  0xe0   :  { %v107_v13 = vpop.xlane.xlu0 %106 }
  0xe1   :  { %v110_v14 = vmul.f32 0.03125, %v107_v13  ;;  %v113_v15 = vmul.f32 %v111_v12, %v111_v12 }
  0xe3   :  { %v112_v16 = vsub.f32 %v3462_v7, %v110_v14  ;;  %v115_v17 = vsel %vm101_vm0, %v113_v15, 0.0 }
  0xe4   :  { %116 = vadd.xlane.f32.xlu1 %v115_v17 }
  0xe5   :  { %v114_v18 = vmul.f32 %v112_v16, %v112_v16 }
  0xe7   :  { %v118_v19 = vsel %vm101_vm0, %v114_v18, 0.0 }
  0xe8   :  { %119 = vadd.xlane.f32.xlu1 %v118_v19 }
 0x171   :  { %v117_v26 = vpop.xlane.xlu1 %116 }
 0x172   :  { %v121_v27 = vmul.f32 0.03125, %v117_v26 }
 0x174   :  { %v123_v28 = vadd.f32 1e-05, %v121_v27 }
 0x175   :  { %v120_v29 = vpop.xlane.xlu1 %119 }
 0x176   :  { %3139 = vrsqrt.f32 %v123_v28  ;;  %v122_v30 = vmul.f32 0.03125, %v120_v29 }
 0x178   :  { %v124_v31 = vadd.f32 1e-05, %v122_v30 }
 0x17a   :  { %3141 = vrsqrt.f32 %v124_v31 }
 0x180   :  { %v3140_v32 = vpop.eup %3139 }
 0x181   :  { %v127_v34 = vmul.f32 %v3140_v32, %v111_v12 }
 0x183   :  { %v133_v36 = vmul.f32 %v2652_v33, %v127_v34 }
 0x184   :  { %v3142_v37 = vpop.eup %3141 }
 0x185   :  { %v128_v38 = vmul.f32 %v3142_v37, %v112_v16  ;;  %v139_v39 = vadd.f32 %v2653_v35, %v133_v36 }
 0x187   :  { %v134_v40 = vmul.f32 %v2652_v33, %v128_v38  ;;  %2840 = vmatprep.mubr.msk.f32.mxu0 %vm101_vm0, %v139_v39 }
 0x189   :  { %v140_v41 = vadd.f32 %v2653_v35, %v134_v40 }
 0x18b   :  { %2841 = vmatmul.mubr.msk.f32.vlgmr.msra.gmra.mrb[0].mxu0 %vm101_vm0, %v140_v41 }
 0x18c   :  { %2865 = vmatprep.mubr.msk.f32.mxu0 %vm3324_vm1, %v3323_v42 }
 0x25e   :  { %v3492_v43 = vpop.f32.mrb[0].mxu0 }
 0x25f   :  { %312 = vrot.lane.b32.xlu1 %v3492_v43, %s3325_s11  ;;  %v3496_v44 = vpop.f32.mrb[1].mxu0  ;;  %v227_v48 = vmul.f32 0.25, %v3492_v43 }
 0x260   :  { %233 = vrot.lane.b32.xlu0 %v3496_v44, %s3325_s11  ;;  %v226_v46 = vmul.f32 0.25, %v3496_v44 }
 0x2d1   :  { %v313_v47 = vpop.permute.xlu1 %312 }
 0x2d2   :  { %v234_v45 = vpop.permute.xlu0 %233 }
 0x2d3   :  { %2844 = vmatpush3.xpose.msk.msra.mxu1 %vm235_vm2, %v234_v45  ;;  %v230_v45 = vld [vmem:[%s3826_s4 + $0x10] sm:$0xff] }
 0x2d4   :  { %2848 = vmatprep.subr.mxu1 %v3323_v42 }
 0x2d6   :  { %2846 = vmatmul.mubr.msk.f32.vlgmr.msra.gmra.mrb[0].mxu1 %vm235_vm2, %v226_v46 }
 0x2d7   :  { %2849 = vmatpush3.xpose.msk.msra.mxu1 %vm235_vm2, %v313_v47  ;;  %2850 = vmatprep.mubr.msk.f32.mxu1 %vm3324_vm1, %v3323_v42  ;;  %v228_v47 = vld [vmem:[%s3826_s4] sm:$0xff] }
 0x2d8   :  { %2853 = vmatprep.subr.mxu1 %v3323_v42 }
 0x2da   :  { %2851 = vmatmul.mubr.msk.f32.vlgmr.msra.gmra.mrb[2].mxu1 %vm235_vm2, %v227_v48 }
 0x2db   :  { %2855 = vmatprep.mubr.msk.f32.mxu1 %vm3324_vm1, %v3323_v42 }
 0x3a9   :  { %v307_v49 = vpop.f32.mrb[0].mxu1 }
 0x3aa   :  { %v2847_v50 = vpop.f32.mrb[1].mxu1  ;;  %v390_v51 = vsel %vm389_vm3, %v307_v49, -inf }
 0x3ab   :  { %391 = vmax.xlane.f32.xlu1 %v390_v51 }
 0x3ad   :  { %v385_v52 = vpop.f32.mrb[2].mxu1 }
 0x3ae   :  { %v2852_v53 = vpop.f32.mrb[3].mxu1  ;;  %v393_v54 = vsel %vm389_vm3, %v385_v52, -inf }
 0x3af   :  { %394 = vmax.xlane.f32.xlu0 %v393_v54  ;;  %v2672_v54 = vld [vmem:[#allocation7 + $0x2] ss:$0 sm:$0xff] }
 0x3bc   :  { %488 = vrot.lane.b32.xlu1 %v3492_v43, %s3326_s0 }
 0x3c0   :  { %566 = vrot.lane.b32.xlu1 %v3496_v44, %s3327_s16 }
 0x3c4   :  { %644 = vrot.lane.b32.xlu1 %v3492_v43, %s3327_s16 }
 0x438   :  { %v392_v55 = vpop.xlane.xlu1 %391 }
 0x439   :  { %v396_v56 = vsub.f32 %v307_v49, %v392_v55 }
 0x43b   :  { %v398_v57 = vmul.f32 1.442695, %v396_v56 }
 0x43c   :  { %v489_v58 = vpop.permute.xlu1 %488  ;;  %v395_v59 = vpop.xlane.xlu0 %394 }
 0x43d   :  { %3143 = vpow2.f32 %v398_v57  ;;  %v397_v60 = vsub.f32 %v385_v52, %v395_v59 }
 0x43f   :  { %v400_v61 = vmul.f32 1.442695, %v397_v60 }
 0x440   :  { %v567_v62 = vpop.permute.xlu1 %566 }
 0x441   :  { %3145 = vpow2.f32 %v400_v61  ;;  %2864 = vmatpush3.xpose.msk.msra.mxu0 %vm235_vm2, %v567_v62 }
 0x442   :  { %2873 = vmatprep.subr.mxu0 %v3323_v42 }
 0x444   :  { %v645_v3 = vpop.permute.xlu1 %644 }
 0x447   :  { %v3144_v63 = vpop.eup %3143 }
 0x448   :  { %v402_v0 = vsel %vm389_vm3, %v3144_v63, 0.0 }
 0x449   :  { %403 = vadd.xlane.f32.xlu0 %v402_v0 }
 0x44b   :  { %v3146_v1 = vpop.eup %3145 }
 0x44c   :  { %v405_v2 = vsel %vm389_vm3, %v3146_v1, 0.0 }
 0x44d   :  { %406 = vadd.xlane.f32.xlu1 %v405_v2 }
 0x45e   :  { %642 = vrot.lane.b32.xlu1 %v227_v48, %s3328_s12  ;;  %v229_v48 = vld [vmem:[%s3826_s4 + $0x8] sm:$0xff] }
 0x45f   :  { %412 = vrot.lane.b32.xlu0 %v3496_v44, %s3326_s0  ;;  %v3045_v49 = vpack.c.bf16 %v229_v48, %v228_v47 }
 0x463   :  { %564 = vrot.lane.b32.xlu0 %v226_v46, %s3328_s12 }
 0x4d6   :  { %v404_v4 = vpop.xlane.xlu0 %403 }
 0x4d7   :  { %3147 = vrcp.f32 %v404_v4 }
 0x4da   :  { %v407_v5 = vpop.xlane.xlu1 %406  ;;  %v413_v8 = vpop.permute.xlu0 %412 }
 0x4db   :  { %3149 = vrcp.f32 %v407_v5  ;;  %2854 = vmatpush3.msra.mxu1 %v413_v8 }
 0x4dc   :  { %2858 = vmatprep.subr.mxu1 %v3323_v42 }
 0x4de   :  { %v565_v9 = vpop.permute.xlu0 %564  ;;  %v643_v14 = vpop.permute.xlu1 %642 }
 0x4df   :  { %2866 = vmatmul.mubr.msk.f32.vlgmr.msra.gmra.mrb[2].mxu0 %vm235_vm2, %v565_v9  ;;  %v1105_v9 = vld [vmem:[%s3827_s5] sm:$0xff] }
 0x4e0   :  { %2875 = vmatprep.mubr.msk.f32.mxu0 %vm3324_vm1, %v3323_v42 }
 0x4e1   :  { %v3148_v10 = vpop.eup %3147 }
 0x4e2   :  { %v410_v11 = vmul.f32 %v3148_v10, %v3144_v63  ;;  %v1106_v10 = vld [vmem:[%s3827_s5 + $0x8] sm:$0xff] }
 0x4e4   :  { %2856 = vmatmul.mubr.msk.f32.vlgmr.msra.gmra.mrb[4].mxu1 %vm389_vm3, %v410_v11  ;;  %v3049_v11 = vpack.c.bf16 %v1106_v10, %v1105_v9 }
 0x4e5   :  { %v3150_v12 = vpop.eup %3149  ;;  %2859 = vmatpush3.msra.mxu1 %v489_v58  ;;  %2860 = vmatprep.mubr.msk.f32.mxu1 %vm3324_vm1, %v3323_v42 }
 0x4e6   :  { %v411_v13 = vmul.f32 %v3150_v12, %v3146_v1  ;;  %2868 = vmatprep.subr.mxu1 %v3323_v42  ;;  %v1107_v12 = vld [vmem:[%s3827_s5 + $0x10] sm:$0xff] }
 0x4e8   :  { %2861 = vmatmul.mubr.msk.f32.vlgmr.msra.gmra.mrb[6].mxu1 %vm389_vm3, %v411_v13  ;;  %v1108_v13 = vld [vmem:[%s3827_s5 + $0x18] sm:$0xff] }
 0x4e9   :  { %2870 = vmatprep.mubr.msk.f32.mxu1 %vm3324_vm1, %v3323_v42 }
 0x4ec   :  { %2869 = vmatpush3.xpose.msk.msra.mxu1 %vm235_vm2, %v645_v3 }
 0x4ed   :  { %2878 = vmatprep.subr.mxu1 %v3323_v42 }
 0x4ef   :  { %2871 = vmatmul.mubr.msk.f32.vlgmr.msra.gmra.mrb[8].mxu1 %vm235_vm2, %v643_v14  ;;  %v3053_v14 = vpack.c.bf16 %v1108_v13, %v1107_v12 }
 0x4f0   :  { %2880 = vmatprep.mubr.msk.f32.mxu1 %vm3324_vm1, %v3323_v42 }
 0x5b2   :  { %v638_v15 = vpop.f32.mrb[2].mxu0 }
 0x5b3   :  { %v2867_v16 = vpop.f32.mrb[3].mxu0  ;;  %v720_v17 = vsel %vm389_vm3, %v638_v15, -inf }
 0x5b4   :  { %721 = vmax.xlane.f32.xlu0 %v720_v17 }
 0x5b7   :  { %v484_v18 = vpop.f32.mrb[4].mxu1 }
 0x5b8   :  { %v2857_v19 = vpop.f32.mrb[5].mxu1 }
 0x5bb   :  { %v560_v20 = vpop.f32.mrb[6].mxu1 }
 0x5bc   :  { %v2862_v21 = vpop.f32.mrb[7].mxu1 }
 0x5c2   :  { %v716_v22 = vpop.f32.mrb[8].mxu1 }
 0x5c3   :  { %v2872_v23 = vpop.f32.mrb[9].mxu1  ;;  %v723_v24 = vsel %vm389_vm3, %v716_v22, -inf }
 0x5c4   :  { %724 = vmax.xlane.f32.xlu1 %v723_v24 }
 0x5d5   :  { %818 = vrot.lane.b32.xlu1 %v3492_v43, %s3329_s13 }
 0x641   :  { %v722_v25 = vpop.xlane.xlu0 %721 }
 0x642   :  { %v726_v26 = vsub.f32 %v638_v15, %v722_v25 }
 0x644   :  { %v728_v27 = vmul.f32 1.442695, %v726_v26  ;;  %v2674_v26 = vld [vmem:[#allocation7 + $0x4] ss:$0 sm:$0xff] }
 0x646   :  { %3151 = vpow2.f32 %v728_v27 }
 0x650   :  { %v3152_v28 = vpop.eup %3151 }
 0x651   :  { %v725_v29 = vpop.xlane.xlu1 %724  ;;  %v732_v30 = vsel %vm389_vm3, %v3152_v28, 0.0 }
 0x652   :  { %v727_v31 = vsub.f32 %v716_v22, %v725_v29  ;;  %733 = vadd.xlane.f32.xlu0 %v732_v30  ;;  %v2673_v22 = vld [vmem:[#allocation7 + $0x3] ss:$0 sm:$0xff] }
 0x654   :  { %v730_v32 = vmul.f32 1.442695, %v727_v31  ;;  %v1205_v31 = vld [vmem:[%s3829_s7] sm:$0xff] }
 0x655   :  { %v819_v33 = vpop.permute.xlu1 %818 }
 0x656   :  { %3153 = vpow2.f32 %v730_v32  ;;  %2879 = vmatpush3.msra.mxu1 %v819_v33  ;;  %v1206_v32 = vld [vmem:[%s3829_s7 + $0x8] sm:$0xff] }
 0x657   :  { %3050 = vmatprep.subr.bf16.mxu1 %v3049_v11  ;;  %v3057_v33 = vpack.c.bf16 %v1206_v32, %v1205_v31  ;;  %v2682_v31 = vld [vmem:[#allocation7 + $0x7] ss:$0 sm:$0xff] }
 0x660   :  { %v3154_v34 = vpop.eup %3153 }
 0x661   :  { %v735_v35 = vsel %vm389_vm3, %v3154_v34, 0.0 }
 0x662   :  { %736 = vadd.xlane.f32.xlu0 %v735_v35  ;;  %v1208_v35 = vld [vmem:[%s3829_s7 + $0x18] sm:$0xff] }
 0x678   :  { %742 = vrot.lane.b32.xlu0 %v3496_v44, %s3329_s13  ;;  %v231_v44 = vld [vmem:[%s3826_s4 + $0x18] sm:$0xff] }
 0x679   :  { %v3041_v46 = vpack.c.bf16 %v231_v44, %v230_v45  ;;  %v2675_v45 = vld [vmem:[%s3828_s6] ss:$0 sm:$0xff] }
 0x6df   :  { %v734_v36 = vpop.xlane.xlu0 %733 }
 0x6e0   :  { %3155 = vrcp.f32 %v734_v36 }
 0x6ea   :  { %v3156_v38 = vpop.eup %3155 }
 0x6eb   :  { %v740_v39 = vmul.f32 %v3156_v38, %v3152_v28  ;;  %v1210_v38 = vld [vmem:[%s3829_s7 + $0x28] sm:$0xff] }
 0x6ef   :  { %v737_v37 = vpop.xlane.xlu0 %736 }
 0x6f0   :  { %3157 = vrcp.f32 %v737_v37  ;;  %v1209_v37 = vld [vmem:[%s3829_s7 + $0x20] sm:$0xff] }
 0x6f3   :  { %v743_v40 = vpop.permute.xlu0 %742 }
 0x6f4   :  { %2874 = vmatpush3.msra.mxu0 %v743_v40  ;;  %v1211_v40 = vld [vmem:[%s3829_s7 + $0x30] sm:$0xff] }
 0x6f5   :  { %2876 = vmatmul.mubr.msk.f32.vlgmr.msra.gmra.mrb[4].mxu0 %vm389_vm3, %v740_v39  ;;  %3042 = vmatprep.subr.bf16.mxu0 %v3041_v46  ;;  %v3065_v39 = vpack.c.bf16 %v1210_v38, %v1209_v37 }
 0x6f6   :  { %3044 = vmatpush3.bf16.msra.mxu0 %v3041_v46 }
 0x6f7   :  { %3046 = vmatprep.subr.bf16.mxu0 %v3045_v49 }
 0x6fa   :  { %v3158_v41 = vpop.eup %3157 }
 0x6fb   :  { %v741_v43 = vmul.f32 %v3158_v41, %v3154_v34  ;;  %v1207_v34 = vld [vmem:[%s3829_s7 + $0x10] sm:$0xff]  ;;  %v1212_v41 = vld [vmem:[%s3829_s7 + $0x38] sm:$0xff] }
 0x6fc   :  { %v3061_v36 = vpack.c.bf16 %v1208_v35, %v1207_v34 }
 0x6fd   :  { %2881 = vmatmul.mubr.msk.f32.vlgmr.msra.gmra.mrb[10].mxu1 %vm389_vm3, %v741_v43  ;;  %v3069_v43 = vpack.c.bf16 %v1212_v41, %v1211_v40 }
 0x6fe   :  { %3052 = vmatpush3.bf16.msra.mxu1 %v3049_v11 }
 0x6ff   :  { %3054 = vmatprep.subr.bf16.mxu1 %v3053_v14 }
 0x702   :  { %3056 = vmatpush3.bf16.msra.mxu1 %v3053_v14  ;;  %v2683_v14 = vld [vmem:[%s3825_s3 + $0x20] sm:$0xff] }
 0x7c8   :  { %v814_v50 = vpop.f32.mrb[4].mxu0 }
 0x7c9   :  { %v2877_v51 = vpop.f32.mrb[5].mxu0  ;;  %2887 = vmatprep.mubr.msk.f32.mxu0 %vm235_vm2, %v814_v50 }
 0x7d0   :  { %v890_v52 = vpop.f32.mrb[10].mxu1 }
 0x7d1   :  { %v2882_v53 = vpop.f32.mrb[11].mxu1  ;;  %2888 = vmatmul.mubr.msk.f32.vlgmr.msra.gmra.mrb[6].mxu0 %vm235_vm2, %v890_v52 }
 0x7d2   :  { %3048 = vmatpush3.bf16.msra.mxu0 %v3045_v49  ;;  %2894 = vmatprep.mubr.msk.f32.mxu0 %vm235_vm2, %v484_v18 }
 0x7d3   :  { %3058 = vmatprep.subr.bf16.mxu0 %v3057_v33 }
 0x7d9   :  { %2895 = vmatmul.mubr.msk.f32.vlgmr.msra.gmra.mrb[6].mxu0 %vm235_vm2, %v560_v20 }
 0x7da   :  { %3060 = vmatpush3.bf16.msra.mxu0 %v3057_v33 }
 0x7db   :  { %3062 = vmatprep.subr.bf16.mxu0 %v3061_v36 }
 0x7de   :  { %3064 = vmatpush3.bf16.msra.mxu0 %v3061_v36 }
 0x7df   :  { %3066 = vmatprep.subr.bf16.mxu0 %v3065_v39 }
 0x7e2   :  { %3068 = vmatpush3.bf16.msra.mxu0 %v3065_v39 }
 0x7e3   :  { %3070 = vmatprep.subr.bf16.mxu0 %v3069_v43 }
 0x7e6   :  { %3072 = vmatpush3.bf16.msra.mxu0 %v3069_v43 }
 0x7e7   :  { %2948 = vmatprep.subr.mxu0 %v3323_v42 }
 0x8ac   :  { %v2896_v55 = vpop.f32.mrb[6].mxu0 }
 0x8ad   :  { %v1062_v56 = vadd.f32 %v2896_v55, %v2672_v54  ;;  %v1047_v57 = vpop.f32.mrb[7].mxu0 }
 0x8ae   :  { %v1061_v58 = vadd.f32 %v2672_v54, %v1047_v57 }
 0x8af   :  { %v3571_v59 = vadd.f32 %v1062_v56, %v3462_v7 }
 0x8b0   :  { %v3574_v60 = vadd.f32 %v1061_v58, %v3460_v6 }
 0x8b1   :  { %v1070_v61 = vsel %vm101_vm0, %v3571_v59, 0.0 }
 0x8b2   :  { %1071 = vadd.xlane.f32.xlu0 %v1070_v61  ;;  %v1067_v62 = vsel %vm101_vm0, %v3574_v60, 0.0  ;;  %v2678_v61 = vld [vmem:[#allocation7 + $0x5] ss:$0 sm:$0xff] }
 0x8b3   :  { %1068 = vadd.xlane.f32.xlu1 %v1067_v62 }
 0x93f   :  { %v1072_v63 = vpop.xlane.xlu0 %1071 }
 0x940   :  { %v1074_v0 = vmul.f32 0.03125, %v1072_v63  ;;  %v1069_v1 = vpop.xlane.xlu1 %1068 }
 0x941   :  { %v1073_v2 = vmul.f32 0.03125, %v1069_v1 }
 0x942   :  { %v1076_v3 = vsub.f32 %v3571_v59, %v1074_v0 }
 0x943   :  { %v1075_v7 = vsub.f32 %v3574_v60, %v1073_v2 }
 0x944   :  { %v1078_v4 = vmul.f32 %v1076_v3, %v1076_v3 }
 0x945   :  { %v1077_v5 = vmul.f32 %v1075_v7, %v1075_v7 }
 0x946   :  { %v1082_v6 = vsel %vm101_vm0, %v1078_v4, 0.0 }
 0x947   :  { %1083 = vadd.xlane.f32.xlu1 %v1082_v6  ;;  %v1079_v8 = vsel %vm101_vm0, %v1077_v5, 0.0 }
 0x948   :  { %1080 = vadd.xlane.f32.xlu0 %v1079_v8 }
 0x9d4   :  { %v1084_v15 = vpop.xlane.xlu1 %1083 }
 0x9d5   :  { %v1086_v16 = vmul.f32 0.03125, %v1084_v15  ;;  %v1081_v17 = vpop.xlane.xlu0 %1080  ;;  %v2684_v15 = vld [vmem:[%s3825_s3 + $0x28] sm:$0xff] }
 0x9d6   :  { %v1085_v18 = vmul.f32 0.03125, %v1081_v17  ;;  %v2685_v17 = vld [vmem:[%s3825_s3 + $0x30] sm:$0xff] }
 0x9d7   :  { %v1088_v19 = vadd.f32 1e-05, %v1086_v16  ;;  %v3073_v16 = vpack.c.bf16 %v2684_v15, %v2683_v14 }
 0x9d8   :  { %v1087_v20 = vadd.f32 1e-05, %v1085_v18  ;;  %v2686_v18 = vld [vmem:[%s3825_s3 + $0x38] sm:$0xff] }
 0x9d9   :  { %3159 = vrsqrt.f32 %v1088_v19  ;;  %3074 = vmatprep.subr.bf16.mxu1 %v3073_v16  ;;  %v3077_v19 = vpack.c.bf16 %v2686_v18, %v2685_v17 }
 0x9da   :  { %3161 = vrsqrt.f32 %v1087_v20 }
 0x9e3   :  { %v3160_v21 = vpop.eup %3159 }
 0x9e4   :  { %v3162_v23 = vpop.eup %3161  ;;  %v1092_v24 = vmul.f32 %v3160_v21, %v1076_v3 }
 0x9e5   :  { %v1091_v25 = vmul.f32 %v3162_v23, %v1075_v7 }
 0x9e6   :  { %v1098_v27 = vmul.f32 %v2673_v22, %v1092_v24 }
 0x9e7   :  { %v1097_v28 = vmul.f32 %v2673_v22, %v1091_v25 }
 0x9e8   :  { %v1104_v30 = vadd.f32 %v2674_v26, %v1098_v27  ;;  %v2681_v27 = vld [vmem:[#allocation7 + $0x6] ss:$0 sm:$0xff] }
 0x9e9   :  { %v1103_v29 = vadd.f32 %v2674_v26, %v1097_v28 }
 0x9eb   :  { %2905 = vmatprep.mubr.msk.f32.mxu1 %vm101_vm0, %v1103_v29 }
 0x9ec   :  { %2906 = vmatmul.mubr.msk.f32.vlgmr.msra.gmra.mrb[12].mxu1 %vm101_vm0, %v1104_v30 }
 0x9ed   :  { %3076 = vmatpush3.bf16.msra.mxu1 %v3073_v16 }
 0x9ee   :  { %3078 = vmatprep.subr.bf16.mxu1 %v3077_v19 }
 0x9f1   :  { %3080 = vmatpush3.bf16.msra.mxu1 %v3077_v19 }
 0x9f2   :  { %2938 = vmatprep.subr.mxu1 %v3323_v42 }
 0xabf   :  { %v2907_v44 = vpop.f32.mrb[12].mxu1 }
 0xac0   :  { %v1192_v46 = vadd.f32 %v2907_v44, %v2675_v45  ;;  %v1186_v47 = vpop.f32.mrb[13].mxu1 }
 0xac1   :  { %v1187_v48 = vadd.f32 %v2675_v45, %v1186_v47 }
 0xac2   :  { %v1198_v49 = vmul.f32 0.70710677, %v1192_v46  ;;  %v1196_v56 = vmul.f32 0.5, %v1192_v46 }
 0xac3   :  { %v1197_v50 = vmul.f32 0.70710677, %v1187_v48  ;;  %v1195_v54 = vmul.f32 0.5, %v1187_v48 }
 0xac4   :  { %3163 = verf.f32 %v1198_v49 }
 0xac5   :  { %3165 = verf.f32 %v1197_v50 }
 0xace   :  { %v3164_v51 = vpop.eup %3163 }
 0xacf   :  { %v3166_v52 = vpop.eup %3165  ;;  %v1202_v53 = vadd.f32 1.0, %v3164_v51 }
 0xad0   :  { %v1201_v55 = vadd.f32 1.0, %v3166_v52 }
 0xad1   :  { %v1204_v58 = vmul.f32 %v1202_v53, %v1196_v56 }
 0xad2   :  { %v1203_v57 = vmul.f32 %v1201_v55, %v1195_v54 }
 0xad4   :  { %2924 = vmatprep.mubr.msk.f32.mxu0 %vm1218_vm4, %v1203_v57 }
 0xad5   :  { %2925 = vmatmul.mubr.msk.f32.vlgmr.msra.gmra.mrb[8].mxu0 %vm1218_vm4, %v1204_v58 }
 0xad6   :  { %2950 = vmatprep.mubr.msk.f32.mxu0 %vm3324_vm1, %v3323_v42 }
 0xba8   :  { %v2926_v62 = vpop.f32.mrb[8].mxu0 }
 0xba9   :  { %v1297_v63 = vadd.f32 %v2926_v62, %v2678_v61  ;;  %v1291_v0 = vpop.f32.mrb[9].mxu0 }
 0xbaa   :  { %v1292_v1 = vadd.f32 %v2678_v61, %v1291_v0 }
 0xbab   :  { %v3631_v2 = vadd.f32 %v1297_v63, %v3571_v59 }
 0xbac   :  { %v3634_v3 = vadd.f32 %v1292_v1, %v3574_v60 }
 0xbad   :  { %v1307_v7 = vsel %vm101_vm0, %v3631_v2, 0.0 }
 0xbae   :  { %1308 = vadd.xlane.f32.xlu1 %v1307_v7  ;;  %v1304_v4 = vsel %vm101_vm0, %v3634_v3, 0.0 }
 0xbaf   :  { %1305 = vadd.xlane.f32.xlu0 %v1304_v4 }
 0xc3b   :  { %v1309_v5 = vpop.xlane.xlu1 %1308 }
 0xc3c   :  { %v1311_v6 = vmul.f32 0.03125, %v1309_v5  ;;  %v1306_v8 = vpop.xlane.xlu0 %1305 }
 0xc3d   :  { %v1310_v9 = vmul.f32 0.03125, %v1306_v8 }
 0xc3e   :  { %v1313_v10 = vsub.f32 %v3631_v2, %v1311_v6 }
 0xc3f   :  { %v1312_v59 = vsub.f32 %v3634_v3, %v1310_v9 }
 0xc40   :  { %v1315_v11 = vmul.f32 %v1313_v10, %v1313_v10 }
 0xc41   :  { %v1314_v12 = vmul.f32 %v1312_v59, %v1312_v59 }
 0xc42   :  { %v1319_v60 = vsel %vm101_vm0, %v1315_v11, 0.0 }
 0xc43   :  { %1320 = vadd.xlane.f32.xlu1 %v1319_v60  ;;  %v1316_v13 = vsel %vm101_vm0, %v1314_v12, 0.0 }
 0xc44   :  { %1317 = vadd.xlane.f32.xlu0 %v1316_v13 }
 0xcd0   :  { %v1321_v20 = vpop.xlane.xlu1 %1320 }
 0xcd1   :  { %v1323_v21 = vmul.f32 0.03125, %v1321_v20  ;;  %v1318_v22 = vpop.xlane.xlu0 %1317 }
 0xcd2   :  { %v1322_v23 = vmul.f32 0.03125, %v1318_v22 }
 0xcd3   :  { %v1325_v24 = vadd.f32 1e-05, %v1323_v21 }
 0xcd4   :  { %v1324_v25 = vadd.f32 1e-05, %v1322_v23 }
 0xcd5   :  { %3167 = vrsqrt.f32 %v1325_v24 }
 0xcd6   :  { %3169 = vrsqrt.f32 %v1324_v25 }
 0xcdf   :  { %v3168_v26 = vpop.eup %3167 }
 0xce0   :  { %v3170_v28 = vpop.eup %3169  ;;  %v1329_v29 = vmul.f32 %v3168_v26, %v1313_v10 }
 0xce1   :  { %v1328_v30 = vmul.f32 %v3170_v28, %v1312_v59 }
 0xce2   :  { %v1335_v32 = vmul.f32 %v2681_v27, %v1329_v29 }
 0xce3   :  { %v1334_v33 = vmul.f32 %v2681_v27, %v1328_v30 }
 0xce4   :  { %v1341_v35 = vadd.f32 %v2682_v31, %v1335_v32 }
 0xce5   :  { %v1340_v34 = vadd.f32 %v2682_v31, %v1334_v33 }
 0xce7   :  { %2935 = vmatprep.mubr.msk.f32.mxu1 %vm101_vm0, %v1340_v34 }
 0xce8   :  { %2936 = vmatmul.mubr.msk.f32.vlgmr.msra.gmra.mrb[14].mxu1 %vm101_vm0, %v1341_v35 }
 0xce9   :  { %2940 = vmatprep.mubr.msk.f32.mxu1 %vm3324_vm1, %v3323_v42 }
 0xdbb   :  { %v3661_v36 = vpop.f32.mrb[14].mxu1 }
 0xdbc   :  { %1514 = vrot.lane.b32.xlu1 %v3661_v36, %s3325_s11  ;;  %v3665_v37 = vpop.f32.mrb[15].mxu1  ;;  %v1429_v41 = vmul.f32 0.25, %v3661_v36 }
 0xdbd   :  { %1436 = vrot.lane.b32.xlu0 %v3665_v37, %s3325_s11  ;;  %v1428_v39 = vmul.f32 0.25, %v3665_v37 }
 0xe2e   :  { %v1515_v40 = vpop.permute.xlu1 %1514 }
 0xe2f   :  { %v1437_v38 = vpop.permute.xlu0 %1436 }
 0xe30   :  { %2939 = vmatpush3.xpose.msk.msra.mxu1 %vm235_vm2, %v1437_v38 }
 0xe31   :  { %2943 = vmatprep.subr.mxu1 %v3323_v42 }
 0xe33   :  { %2941 = vmatmul.mubr.msk.f32.vlgmr.msra.gmra.mrb[16].mxu1 %vm235_vm2, %v1428_v39 }
 0xe34   :  { %2944 = vmatpush3.xpose.msk.msra.mxu1 %vm235_vm2, %v1515_v40  ;;  %2945 = vmatprep.mubr.msk.f32.mxu1 %vm3324_vm1, %v3323_v42  ;;  %v2690_v40 = vld [vmem:[%s3826_s4 + $0x28] sm:$0xff] }
 0xe35   :  { %2953 = vmatprep.subr.mxu1 %v3323_v42 }
 0xe37   :  { %2946 = vmatmul.mubr.msk.f32.vlgmr.msra.gmra.mrb[18].mxu1 %vm235_vm2, %v1429_v41 }
 0xe38   :  { %2955 = vmatprep.mubr.msk.f32.mxu1 %vm3324_vm1, %v3323_v42 }
 0xf06   :  { %v1509_v43 = vpop.f32.mrb[16].mxu1 }
 0xf07   :  { %v2942_v45 = vpop.f32.mrb[17].mxu1  ;;  %v1591_v44 = vsel %vm389_vm3, %v1509_v43, -inf }
 0xf08   :  { %1592 = vmax.xlane.f32.xlu1 %v1591_v44 }
 0xf0a   :  { %v1587_v46 = vpop.f32.mrb[18].mxu1 }
 0xf0b   :  { %v2947_v47 = vpop.f32.mrb[19].mxu1  ;;  %v1594_v48 = vsel %vm389_vm3, %v1587_v46, -inf }
 0xf0c   :  { %1595 = vmax.xlane.f32.xlu0 %v1594_v48  ;;  %v2709_v47 = vld [vmem:[#allocation7 + $0x8] ss:$0 sm:$0xff] }
 0xf19   :  { %1689 = vrot.lane.b32.xlu1 %v3661_v36, %s3326_s0 }
 0xf1d   :  { %1767 = vrot.lane.b32.xlu1 %v3665_v37, %s3327_s16 }
 0xf21   :  { %1845 = vrot.lane.b32.xlu1 %v3661_v36, %s3327_s16 }
 0xf22   :  { %1613 = vrot.lane.b32.xlu0 %v3665_v37, %s3326_s0 }
 0xf95   :  { %v1593_v49 = vpop.xlane.xlu1 %1592 }
 0xf96   :  { %v1597_v50 = vsub.f32 %v1509_v43, %v1593_v49 }
 0xf98   :  { %v1599_v51 = vmul.f32 1.442695, %v1597_v50 }
 0xf99   :  { %v1690_v52 = vpop.permute.xlu1 %1689  ;;  %v1596_v53 = vpop.xlane.xlu0 %1595 }
 0xf9a   :  { %3171 = vpow2.f32 %v1599_v51  ;;  %v1598_v54 = vsub.f32 %v1587_v46, %v1596_v53  ;;  %2954 = vmatpush3.msra.mxu1 %v1690_v52 }
 0xf9b   :  { %2963 = vmatprep.subr.mxu1 %v3323_v42 }
 0xf9c   :  { %v1601_v55 = vmul.f32 1.442695, %v1598_v54 }
 0xf9d   :  { %v1614_v56 = vpop.permute.xlu0 %1613  ;;  %v1768_v63 = vpop.permute.xlu1 %1767 }
 0xf9e   :  { %3173 = vpow2.f32 %v1601_v55  ;;  %2949 = vmatpush3.msra.mxu0 %v1614_v56 }
 0xf9f   :  { %2958 = vmatprep.subr.mxu0 %v3323_v42 }
 0xfa1   :  { %v1846_v0 = vpop.permute.xlu1 %1845 }
 0xfa4   :  { %v3172_v57 = vpop.eup %3171 }
 0xfa5   :  { %v1603_v58 = vsel %vm389_vm3, %v3172_v57, 0.0 }
 0xfa6   :  { %1604 = vadd.xlane.f32.xlu0 %v1603_v58 }
 0xfa8   :  { %v3174_v61 = vpop.eup %3173 }
 0xfa9   :  { %v1606_v62 = vsel %vm389_vm3, %v3174_v61, 0.0 }
 0xfaa   :  { %1607 = vadd.xlane.f32.xlu1 %v1606_v62 }
 0xfbb   :  { %1843 = vrot.lane.b32.xlu1 %v1429_v41, %s3328_s12 }
 0xfbc   :  { %1765 = vrot.lane.b32.xlu0 %v1428_v39, %s3328_s12  ;;  %v2689_v39 = vld [vmem:[%s3826_s4 + $0x20] sm:$0xff] }
 0xfbd   :  { %v3085_v41 = vpack.c.bf16 %v2690_v40, %v2689_v39 }
0x1033   :  { %v1605_v1 = vpop.xlane.xlu0 %1604 }
0x1034   :  { %3175 = vrcp.f32 %v1605_v1 }
0x1037   :  { %v1608_v7 = vpop.xlane.xlu1 %1607  ;;  %v1766_v9 = vpop.permute.xlu0 %1765 }
0x1038   :  { %3177 = vrcp.f32 %v1608_v7  ;;  %v2712_v7 = vld [vmem:[%s3827_s5 + $0x20] sm:$0xff] }
0x103b   :  { %v1844_v10 = vpop.permute.xlu1 %1843 }
0x103e   :  { %v3176_v4 = vpop.eup %3175 }
0x103f   :  { %v1611_v5 = vmul.f32 %v3176_v4, %v3172_v57  ;;  %v2713_v4 = vld [vmem:[%s3827_s5 + $0x28] sm:$0xff] }
0x1041   :  { %2951 = vmatmul.mubr.msk.f32.vlgmr.msra.gmra.mrb[10].mxu0 %vm389_vm3, %v1611_v5  ;;  %v3089_v5 = vpack.c.bf16 %v2713_v4, %v2712_v7 }
0x1042   :  { %v3178_v6 = vpop.eup %3177  ;;  %2959 = vmatpush3.xpose.msk.msra.mxu0 %vm235_vm2, %v1768_v63  ;;  %2960 = vmatprep.mubr.msk.f32.mxu0 %vm3324_vm1, %v3323_v42 }
0x1043   :  { %v1612_v8 = vmul.f32 %v3178_v6, %v3174_v61  ;;  %2968 = vmatprep.subr.mxu0 %v3323_v42  ;;  %v2714_v6 = vld [vmem:[%s3827_s5 + $0x30] sm:$0xff] }
0x1045   :  { %2956 = vmatmul.mubr.msk.f32.vlgmr.msra.gmra.mrb[20].mxu1 %vm389_vm3, %v1612_v8  ;;  %2961 = vmatmul.mubr.msk.f32.vlgmr.msra.gmra.mrb[12].mxu0 %vm235_vm2, %v1766_v9  ;;  %v2715_v8 = vld [vmem:[%s3827_s5 + $0x38] sm:$0xff] }
0x1046   :  { %2964 = vmatpush3.xpose.msk.msra.mxu1 %vm235_vm2, %v1846_v0  ;;  %2965 = vmatprep.mubr.msk.f32.mxu1 %vm3324_vm1, %v3323_v42  ;;  %v3093_v9 = vpack.c.bf16 %v2715_v8, %v2714_v6 }
0x1047   :  { %2973 = vmatprep.subr.mxu1 %v3323_v42  ;;  %2970 = vmatprep.mubr.msk.f32.mxu0 %vm3324_vm1, %v3323_v42 }
0x1049   :  { %2966 = vmatmul.mubr.msk.f32.vlgmr.msra.gmra.mrb[22].mxu1 %vm235_vm2, %v1844_v10 }
0x104a   :  { %2975 = vmatprep.mubr.msk.f32.mxu1 %vm3324_vm1, %v3323_v42 }
0x1114   :  { %v1685_v59 = vpop.f32.mrb[10].mxu0 }
0x1115   :  { %v2952_v11 = vpop.f32.mrb[11].mxu0 }
0x1118   :  { %v1761_v12 = vpop.f32.mrb[20].mxu1  ;;  %v1839_v60 = vpop.f32.mrb[12].mxu0 }
0x1119   :  { %v2957_v13 = vpop.f32.mrb[21].mxu1  ;;  %v2962_v14 = vpop.f32.mrb[13].mxu0  ;;  %v1921_v15 = vsel %vm389_vm3, %v1839_v60, -inf }
0x111a   :  { %1922 = vmax.xlane.f32.xlu0 %v1921_v15  ;;  %v2710_v15 = vld [vmem:[#allocation7 + $0x9] ss:$0 sm:$0xff] }
0x111c   :  { %v1917_v16 = vpop.f32.mrb[22].mxu1 }
0x111d   :  { %v2967_v17 = vpop.f32.mrb[23].mxu1  ;;  %v1924_v18 = vsel %vm389_vm3, %v1917_v16, -inf }
0x111e   :  { %1925 = vmax.xlane.f32.xlu1 %v1924_v18 }
0x112f   :  { %2019 = vrot.lane.b32.xlu1 %v3661_v36, %s3329_s13  ;;  %v2691_v36 = vld [vmem:[%s3826_s4 + $0x30] sm:$0xff] }
0x11a7   :  { %v1923_v19 = vpop.xlane.xlu0 %1922 }
0x11a8   :  { %v1927_v20 = vsub.f32 %v1839_v60, %v1923_v19  ;;  %v2711_v19 = vld [vmem:[#allocation7 + $0xa] ss:$0 sm:$0xff] }
0x11aa   :  { %v1929_v42 = vmul.f32 1.442695, %v1927_v20 }
0x11ab   :  { %v1926_v21 = vpop.xlane.xlu1 %1925 }
0x11ac   :  { %3179 = vpow2.f32 %v1929_v42  ;;  %v1928_v22 = vsub.f32 %v1917_v16, %v1926_v21 }
0x11ae   :  { %v1931_v23 = vmul.f32 1.442695, %v1928_v22 }
0x11af   :  { %v2020_v24 = vpop.permute.xlu1 %2019 }
0x11b0   :  { %3181 = vpow2.f32 %v1931_v23  ;;  %2974 = vmatpush3.msra.mxu1 %v2020_v24  ;;  %v2719_v23 = vld [vmem:[%s3829_s7 + $0x40] sm:$0xff]  ;;  %v2720_v24 = vld [vmem:[%s3829_s7 + $0x48] sm:$0xff] }
0x11b1   :  { %3090 = vmatprep.subr.bf16.mxu1 %v3089_v5 }
0x11b6   :  { %v3180_v25 = vpop.eup %3179 }
0x11b7   :  { %v1933_v26 = vsel %vm389_vm3, %v3180_v25, 0.0 }
0x11b8   :  { %1934 = vadd.xlane.f32.xlu0 %v1933_v26  ;;  %v2721_v26 = vld [vmem:[%s3829_s7 + $0x50] sm:$0xff] }
0x11ba   :  { %v3182_v27 = vpop.eup %3181 }
0x11bb   :  { %v1936_v28 = vsel %vm389_vm3, %v3182_v27, 0.0 }
0x11bc   :  { %1937 = vadd.xlane.f32.xlu0 %v1936_v28 }
0x11d2   :  { %1943 = vrot.lane.b32.xlu0 %v3665_v37, %s3329_s13  ;;  %v2692_v37 = vld [vmem:[%s3826_s4 + $0x38] sm:$0xff] }
0x11d3   :  { %v3081_v38 = vpack.c.bf16 %v2692_v37, %v2691_v36 }
0x1245   :  { %v1935_v29 = vpop.xlane.xlu0 %1934 }
0x1246   :  { %3183 = vrcp.f32 %v1935_v29  ;;  %v2723_v29 = vld [vmem:[%s3829_s7 + $0x60] sm:$0xff] }
0x1249   :  { %v1938_v30 = vpop.xlane.xlu0 %1937 }
0x124a   :  { %3185 = vrcp.f32 %v1938_v30  ;;  %v2724_v30 = vld [vmem:[%s3829_s7 + $0x68] sm:$0xff] }
0x124d   :  { %v1944_v31 = vpop.permute.xlu0 %1943 }
0x124e   :  { %2969 = vmatpush3.msra.mxu0 %v1944_v31  ;;  %v3105_v31 = vpack.c.bf16 %v2724_v30, %v2723_v29 }
0x124f   :  { %3082 = vmatprep.subr.bf16.mxu0 %v3081_v38 }
0x1250   :  { %v3184_v32 = vpop.eup %3183 }
0x1251   :  { %v1941_v33 = vmul.f32 %v3184_v32, %v3180_v25  ;;  %v3097_v25 = vpack.c.bf16 %v2720_v24, %v2719_v23  ;;  %v2725_v32 = vld [vmem:[%s3829_s7 + $0x70] sm:$0xff]  ;;  %v2731_v24 = vld [vmem:[%s3831_s9] ss:$0 sm:$0xff] }
0x1253   :  { %2971 = vmatmul.mubr.msk.f32.vlgmr.msra.gmra.mrb[14].mxu0 %vm389_vm3, %v1941_v33  ;;  %v2726_v33 = vld [vmem:[%s3829_s7 + $0x78] sm:$0xff] }
0x1254   :  { %v3186_v34 = vpop.eup %3185  ;;  %3084 = vmatpush3.bf16.msra.mxu0 %v3081_v38 }
0x1255   :  { %v1942_v35 = vmul.f32 %v3186_v34, %v3182_v27  ;;  %3086 = vmatprep.subr.bf16.mxu0 %v3085_v41  ;;  %v2722_v27 = vld [vmem:[%s3829_s7 + $0x58] sm:$0xff]  ;;  %v3109_v34 = vpack.c.bf16 %v2726_v33, %v2725_v32 }
0x1256   :  { %v3101_v28 = vpack.c.bf16 %v2722_v27, %v2721_v26 }
0x1257   :  { %2976 = vmatmul.mubr.msk.f32.vlgmr.msra.gmra.mrb[24].mxu1 %vm389_vm3, %v1942_v35  ;;  %v2716_v35 = vld [vmem:[%s3828_s6 + $0x1] ss:$0 sm:$0xff] }
0x1258   :  { %3092 = vmatpush3.bf16.msra.mxu1 %v3089_v5 }
0x1259   :  { %3094 = vmatprep.subr.bf16.mxu1 %v3093_v9 }
0x125c   :  { %3096 = vmatpush3.bf16.msra.mxu1 %v3093_v9  ;;  %v2540_v9 = vld [vmem:[#allocation8 + $0x8] sm:$0xff] }
0x1326   :  { %v2015_v43 = vpop.f32.mrb[14].mxu0 }
0x1327   :  { %v2972_v45 = vpop.f32.mrb[15].mxu0  ;;  %2982 = vmatprep.mubr.msk.f32.mxu0 %vm235_vm2, %v2015_v43 }
0x132a   :  { %v2091_v44 = vpop.f32.mrb[24].mxu1 }
0x132b   :  { %v2977_v46 = vpop.f32.mrb[25].mxu1  ;;  %2983 = vmatmul.mubr.msk.f32.vlgmr.msra.gmra.mrb[16].mxu0 %vm235_vm2, %v2091_v44 }
0x132c   :  { %3088 = vmatpush3.bf16.msra.mxu0 %v3085_v41  ;;  %2989 = vmatprep.mubr.msk.f32.mxu0 %vm235_vm2, %v1685_v59 }
0x132d   :  { %3098 = vmatprep.subr.bf16.mxu0 %v3097_v25 }
0x1333   :  { %2990 = vmatmul.mubr.msk.f32.vlgmr.msra.gmra.mrb[16].mxu0 %vm235_vm2, %v1761_v12 }
0x1334   :  { %3100 = vmatpush3.bf16.msra.mxu0 %v3097_v25 }
0x1335   :  { %3102 = vmatprep.subr.bf16.mxu0 %v3101_v28 }
0x1338   :  { %3104 = vmatpush3.bf16.msra.mxu0 %v3101_v28 }
0x1339   :  { %3106 = vmatprep.subr.bf16.mxu0 %v3105_v31 }
0x133c   :  { %3108 = vmatpush3.bf16.msra.mxu0 %v3105_v31 }
0x133d   :  { %3110 = vmatprep.subr.bf16.mxu0 %v3109_v34 }
0x1340   :  { %3112 = vmatpush3.bf16.msra.mxu0 %v3109_v34 }
0x1406   :  { %v2991_v48 = vpop.f32.mrb[16].mxu0 }
0x1407   :  { %v2263_v49 = vadd.f32 %v2991_v48, %v2709_v47  ;;  %v2248_v50 = vpop.f32.mrb[17].mxu0 }
0x1408   :  { %v2262_v51 = vadd.f32 %v2709_v47, %v2248_v50 }
0x1409   :  { %v3740_v52 = vadd.f32 %v2263_v49, %v3631_v2 }
0x140a   :  { %v3743_v53 = vadd.f32 %v2262_v51, %v3634_v3  ;;  %v2727_v51 = vld [vmem:[#allocation7 + $0xb] ss:$0 sm:$0xff] }
0x140b   :  { %v2271_v54 = vsel %vm101_vm0, %v3740_v52, 0.0 }
0x140c   :  { %2272 = vadd.xlane.f32.xlu0 %v2271_v54  ;;  %v2268_v55 = vsel %vm101_vm0, %v3743_v53, 0.0 }
0x140d   :  { %2269 = vadd.xlane.f32.xlu1 %v2268_v55 }
0x1499   :  { %v2273_v56 = vpop.xlane.xlu0 %2272 }
0x149a   :  { %v2275_v57 = vmul.f32 0.03125, %v2273_v56  ;;  %v2270_v58 = vpop.xlane.xlu1 %2269 }
0x149b   :  { %v2274_v61 = vmul.f32 0.03125, %v2270_v58 }
0x149c   :  { %v2277_v62 = vsub.f32 %v3740_v52, %v2275_v57 }
0x149d   :  { %v2276_v2 = vsub.f32 %v3743_v53, %v2274_v61 }
0x149e   :  { %v2279_v63 = vmul.f32 %v2277_v62, %v2277_v62 }
0x149f   :  { %v2278_v0 = vmul.f32 %v2276_v2, %v2276_v2 }
0x14a0   :  { %v2283_v3 = vsel %vm101_vm0, %v2279_v63, 0.0 }
0x14a1   :  { %2284 = vadd.xlane.f32.xlu1 %v2283_v3  ;;  %v2280_v1 = vsel %vm101_vm0, %v2278_v0, 0.0 }
0x14a2   :  { %2281 = vadd.xlane.f32.xlu0 %v2280_v1 }
0x152e   :  { %v2285_v10 = vpop.xlane.xlu1 %2284 }
0x152f   :  { %v2287_v59 = vmul.f32 0.03125, %v2285_v10  ;;  %v2282_v11 = vpop.xlane.xlu0 %2281  ;;  %v2541_v10 = vld [vmem:[#allocation8 + $0x10] sm:$0xff] }
0x1530   :  { %v2286_v12 = vmul.f32 0.03125, %v2282_v11  ;;  %v2542_v11 = vld [vmem:[#allocation8 + $0x18] sm:$0xff] }
0x1531   :  { %v2289_v60 = vadd.f32 1e-05, %v2287_v59 }
0x1532   :  { %v2288_v13 = vadd.f32 1e-05, %v2286_v12  ;;  %v3117_v12 = vpack.c.bf16 %v2542_v11, %v2541_v10 }
0x1533   :  { %3187 = vrsqrt.f32 %v2289_v60 }
0x1534   :  { %3189 = vrsqrt.f32 %v2288_v13 }
0x153d   :  { %v3188_v14 = vpop.eup %3187 }
0x153e   :  { %v3190_v16 = vpop.eup %3189  ;;  %v2293_v17 = vmul.f32 %v3188_v14, %v2277_v62 }
0x153f   :  { %v2292_v18 = vmul.f32 %v3190_v16, %v2276_v2 }
0x1540   :  { %v2299_v20 = vmul.f32 %v2710_v15, %v2293_v17 }
0x1541   :  { %v2298_v42 = vmul.f32 %v2710_v15, %v2292_v18 }
0x1542   :  { %v2305_v22 = vadd.f32 %v2711_v19, %v2299_v20  ;;  %v2730_v20 = vld [vmem:[#allocation7 + $0xc] ss:$0 sm:$0xff] }
0x1543   :  { %v2304_v21 = vadd.f32 %v2711_v19, %v2298_v42 }
0x1545   :  { %3000 = vmatprep.mubr.msk.f32.mxu1 %vm101_vm0, %v2304_v21 }
0x1546   :  { %3001 = vmatmul.mubr.msk.f32.vlgmr.msra.gmra.mrb[26].mxu1 %vm101_vm0, %v2305_v22 }
0x1619   :  { %v3002_v36 = vpop.f32.mrb[26].mxu1 }
0x161a   :  { %v2394_v37 = vadd.f32 %v3002_v36, %v2716_v35  ;;  %v2388_v38 = vpop.f32.mrb[27].mxu1 }
0x161b   :  { %v2389_v39 = vadd.f32 %v2716_v35, %v2388_v38 }
0x161c   :  { %v2400_v40 = vmul.f32 0.70710677, %v2394_v37  ;;  %v2398_v48 = vmul.f32 0.5, %v2394_v37 }
0x161d   :  { %v2399_v41 = vmul.f32 0.70710677, %v2389_v39  ;;  %v2397_v46 = vmul.f32 0.5, %v2389_v39 }
0x161e   :  { %3191 = verf.f32 %v2400_v40 }
0x161f   :  { %3193 = verf.f32 %v2399_v41 }
0x1628   :  { %v3192_v43 = vpop.eup %3191 }
0x1629   :  { %v3194_v45 = vpop.eup %3193  ;;  %v2404_v44 = vadd.f32 1.0, %v3192_v43 }
0x162a   :  { %v2403_v47 = vadd.f32 1.0, %v3194_v45 }
0x162b   :  { %v2406_v50 = vmul.f32 %v2404_v44, %v2398_v48 }
0x162c   :  { %v2405_v49 = vmul.f32 %v2403_v47, %v2397_v46 }
0x162e   :  { %3019 = vmatprep.mubr.msk.f32.mxu0 %vm1218_vm4, %v2405_v49 }
0x162f   :  { %3020 = vmatmul.mubr.msk.f32.vlgmr.msra.gmra.mrb[18].mxu0 %vm1218_vm4, %v2406_v50 }
0x1702   :  { %v3021_v54 = vpop.f32.mrb[18].mxu0 }
0x1703   :  { %v2499_v55 = vadd.f32 %v3021_v54, %v2727_v51  ;;  %v2493_v56 = vpop.f32.mrb[19].mxu0 }
0x1704   :  { %v2494_v57 = vadd.f32 %v2727_v51, %v2493_v56 }
0x1705   :  { %v2503_v58 = vadd.f32 %v2499_v55, %v3740_v52 }
0x1706   :  { %v2502_v61 = vadd.f32 %v2494_v57, %v3743_v53  ;;  %v2539_v53 = vld [vmem:[#allocation8] sm:$0xff] }
0x1707   :  { %v2508_v62 = vsel %vm101_vm0, %v2503_v58, 0.0  ;;  %v3113_v59 = vpack.c.bf16 %v2540_v9, %v2539_v53 }
0x1708   :  { %2509 = vadd.xlane.f32.xlu1 %v2508_v62  ;;  %v2505_v2 = vsel %vm101_vm0, %v2502_v61, 0.0 }
0x1709   :  { %2506 = vadd.xlane.f32.xlu0 %v2505_v2  ;;  %3114 = vmatprep.subr.bf16.mxu1 %v3113_v59 }
0x170a   :  { %3116 = vmatpush3.bf16.msra.mxu1 %v3113_v59 }
0x170b   :  { %3118 = vmatprep.subr.bf16.mxu1 %v3117_v12 }
0x170e   :  { %3120 = vmatpush3.bf16.msra.mxu1 %v3117_v12 }
0x1795   :  { %v2510_v63 = vpop.xlane.xlu1 %2509 }
0x1796   :  { %v2512_v0 = vmul.f32 0.03125, %v2510_v63  ;;  %v2507_v3 = vpop.xlane.xlu0 %2506 }
0x1797   :  { %v2511_v1 = vmul.f32 0.03125, %v2507_v3 }
0x1798   :  { %v2514_v7 = vsub.f32 %v2503_v58, %v2512_v0 }
0x1799   :  { %v2513_v4 = vsub.f32 %v2502_v61, %v2511_v1 }
0x179a   :  { %v2516_v5 = vmul.f32 %v2514_v7, %v2514_v7 }
0x179b   :  { %v2515_v6 = vmul.f32 %v2513_v4, %v2513_v4 }
0x179c   :  { %v2520_v8 = vsel %vm101_vm0, %v2516_v5, 0.0 }
0x179d   :  { %2521 = vadd.xlane.f32.xlu1 %v2520_v8  ;;  %v2517_v52 = vsel %vm101_vm0, %v2515_v6, 0.0 }
0x179e   :  { %2518 = vadd.xlane.f32.xlu0 %v2517_v52 }
0x182a   :  { %v2522_v60 = vpop.xlane.xlu1 %2521 }
0x182b   :  { %v2524_v13 = vmul.f32 0.03125, %v2522_v60  ;;  %v2519_v14 = vpop.xlane.xlu0 %2518 }
0x182c   :  { %v2523_v15 = vmul.f32 0.03125, %v2519_v14 }
0x182d   :  { %v2526_v16 = vadd.f32 1e-05, %v2524_v13 }
0x182e   :  { %v2525_v17 = vadd.f32 1e-05, %v2523_v15 }
0x182f   :  { %3195 = vrsqrt.f32 %v2526_v16 }
0x1830   :  { %3197 = vrsqrt.f32 %v2525_v17 }
0x1839   :  { %v3196_v18 = vpop.eup %3195 }
0x183a   :  { %v3198_v19 = vpop.eup %3197  ;;  %v2530_v42 = vmul.f32 %v3196_v18, %v2514_v7 }
0x183b   :  { %v2529_v21 = vmul.f32 %v3198_v19, %v2513_v4 }
0x183c   :  { %v2536_v23 = vmul.f32 %v2730_v20, %v2530_v42 }
0x183d   :  { %v2535_v22 = vmul.f32 %v2730_v20, %v2529_v21 }
0x183f   :  { %3030 = vmatprep.mubr.msk.f32.mxu1 %vm101_vm0, %v2535_v22 }
0x1840   :  { %3031 = vmatmul.mubr.msk.f32.vlgmr.msra.gmra.mrb[28].mxu1 %vm101_vm0, %v2536_v23 }
0x1913   :  { %v3032_v25 = vpop.f32.mrb[28].mxu1 }
0x1914   :  { %v2628_v26 = vadd.f32 %v3032_v25, %v2731_v24  ;;  %v2622_v27 = vpop.f32.mrb[29].mxu1 }
0x1915   :  { %v2623_v28 = vadd.f32 %v2731_v24, %v2622_v27 }
0x1916   :  { %2632 = vst [vmem:[#allocation10 + $0x8] sm:$0xff] %v2628_v26 }
0x1917   :  { %2631 = vst [vmem:[#allocation10] sm:$0xff] %v2623_v28 }
0x1918   :  { %3298 = shalt.err (!%p3295_p8)
}
0x1919   :  { %s3299_s9 = scalar_lea.hbm %s3832_s10, 256 }
0x191a   :  { %p3300_p9 = scmp.ne.s32.totalorder %s3832_s10, %s3299_s9  ;;  %p3303_p10 = scmp.lt.u32.totalorder %s3299_s9, %s3832_s10 }
0x191c   :  { %p3305_p11 = pnand %p3303_p10, %p3300_p9 }
0x191e   :  { %3308 = shalt.err (!%p3305_p11)
}
0x191f   :  { %2644 = dma.vmem_to_hbm [thread:$0]  %s2639_s23, 256, %s3832_s10, [#allocation4], %s3319_s25, %s3319_s25, %s3320_s26  }
0x1920   :  { %3315 = dma.done.wait [#allocation4], 256  }
0x1921   :  { %3316 = vsyncadd [#allocation4], 4294967040 }
0x1922   :  { %2648 = vsyncpa [#allocation3], 1 }
0x1923   :  { %2649 = vsyncpa [#allocation6], 1 }
0x1924   :  { %2650 = vsyncpa [#allocation9], 1 }
0x1925   :  { %2651 = vsyncpa [#allocation4], 1 }

</bundles_post_ra>
